<compile_context>
chip_gen: v5e
topology: v5e:2x2
jax: 0.10.0
libtpu: 0.0.40
codegen_flags: <defaults>
</compile_context>

<pallas_src>
import jax
import jax.numpy as jnp
from jax.experimental import pallas as pl
from jax.experimental.pallas import tpu as pltpu

_EPS = 1e-5  # PyTorch GroupNorm default eps


# ----------------------------- kernel-side helpers --------------------------------

def _conv3x3(a, b_ref, bias, mask_top, mask_bot):
    """3x3 'same' conv in the flattened (N*H, W*Cin) layout.

    a        : (N*H, W*Cin) f32 activation value.
    b_ref    : (3, W*Cin, W*Cout) bf16 banded weight matrices (one per vertical tap dy).
    bias     : (1, W*Cout) f32.
    mask_top : (N*H, 1) f32, zero on each sample's first row (kills cross-sample wrap).
    mask_bot : (N*H, 1) f32, zero on each sample's last row.
    """
    nh = a.shape[0]
    # Vertical taps via sublane rotations (XLU) + boundary masks instead of (H,H) matmuls.
    up = pltpu.roll(a, shift=1, axis=0) * mask_top        # row h <- a[h-1]   (dy = 0)
    dn = pltpu.roll(a, shift=nh - 1, axis=0) * mask_bot   # row h <- a[h+1]   (dy = 2)
    acc = jnp.dot(up.astype(jnp.bfloat16), b_ref[0], preferred_element_type=jnp.float32)
    acc = acc + jnp.dot(a.astype(jnp.bfloat16), b_ref[1], preferred_element_type=jnp.float32)
    acc = acc + jnp.dot(dn.astype(jnp.bfloat16), b_ref[2], preferred_element_type=jnp.float32)
    return acc + bias


def _gn_relu(y, gamma, beta, n_samples):
    """GroupNorm(num_groups=1) + ReLU, per-sample two-pass statistics in f32.

    y: (N*H, W*C) f32; gamma/beta: (1, W*C) f32 (channel params tiled over W).
    """
    nh = y.shape[0]
    hl = nh // n_samples
    chunks = []
    for n in range(n_samples):                      # static unroll; N is small here
        blk = y[n * hl:(n + 1) * hl, :]             # tile-aligned static row slice
        mean = jnp.mean(blk)
        d = blk - mean
        var = jnp.mean(d * d)                       # two-pass (mean-subtracted) variance
        chunks.append(d * jax.lax.rsqrt(var + _EPS))
    yn = jnp.concatenate(chunks, axis=0) if n_samples > 1 else chunks[0]
    return jnp.maximum(yn * gamma + beta, 0.0)


def _make_block_kernel(plan, has_ds, n_samples):
    """Builds the single fused kernel for the whole ResidualBlock.

    plan: tuple of bools, one per ResidualLayer (True -> projection paths present).
    """

    def kernel(*refs):
        x_ref, o_ref = refs[0], refs[-1]
        it = iter(refs[1:-1])

        def nxt():
            return next(it)

        mask_top = nxt()[...]
        mask_bot = nxt()[...]
        a = x_ref[...]                              # (N*H, W*Cin) f32, resident in VMEM

        for has_proj in plan:                       # static unroll over layers
            b1 = nxt()
            bias1 = nxt()[...]
            g1 = nxt()[...]
            be1 = nxt()[...]
            b2 = nxt()
            bias2 = nxt()[...]
            g2 = nxt()[...]
            be2 = nxt()[...]
            y = _gn_relu(_conv3x3(a, b1, bias1, mask_top, mask_bot), g1, be1, n_samples)
            y = _gn_relu(_conv3x3(y, b2, bias2, mask_top, mask_bot), g2, be2, n_samples)
            if has_proj:
                bp = nxt()
                biasp = nxt()[...]
                bdr = nxt()
                biaspr = nxt()[...]
                yp = _conv3x3(y, bp, biasp, mask_top, mask_bot)      # 3x3 projection
                res = jnp.dot(a.astype(jnp.bfloat16), bdr[...],      # 1x1 proj residual
                              preferred_element_type=jnp.float32) + biaspr
                a = jnp.maximum(yp + res, 0.0)
            else:
                a = jnp.maximum(y + a, 0.0)

        if has_ds:                                   # 2x2 / stride-2 conv
            sel = nxt()[...]
            bd = nxt()
            bias_d = nxt()[...]
            nh = a.shape[0]
            row_below = pltpu.roll(a, shift=nh - 1, axis=0)          # row h <- a[h+1]
            comb = jnp.dot(a.astype(jnp.bfloat16), bd[0],
                           preferred_element_type=jnp.float32)
            comb = comb + jnp.dot(row_below.astype(jnp.bfloat16), bd[1],
                                  preferred_element_type=jnp.float32)
            # stride-2 row selection (tiny f32 matmul; exact 0/1 selection)
            a = jnp.dot(sel, comb, preferred_element_type=jnp.float32) + bias_d

        o_ref[...] = a.astype(o_ref.dtype)

    return kernel


# ----------------------- wrapper-side (one-time) weight preprocessing ---------------

def _full_spec(shape):
    nd = len(shape)
    return pl.BlockSpec(tuple(shape), lambda i, _nd=nd: (0,) * _nd)


def _tile_c(v, W):
    """Per-channel vector -> (1, W*C) so index w*C + c picks v[c]."""
    return jnp.tile(v, W).reshape(1, -1).astype(jnp.float32)


def _band3(w, W):
    """w: (3, 3, Cin, Cout) HWIO -> (3, W*Cin, W*Cout) bf16 banded matrices.

    B[dy][(wo+dx-1)*Cin + ci, wo*Cout + co] = w[dy, dx, ci, co]; out-of-range wo+dx-1
    entries are absent, which encodes the 'same' zero padding along the width axis.
    """
    mats = []
    for dy in range(3):
        b = 0.0
        for dx in range(3):
            q = jnp.eye(W, k=1 - dx, dtype=jnp.float32)  # q[w_src, wo]=1 iff w_src==wo+dx-1
            b = b + jnp.kron(q, w[dy, dx])
        mats.append(b)
    return jnp.stack(mats).astype(jnp.bfloat16)


def _band_ds(w, W):
    """w: (2, 2, C, Cout) -> (2, W*C, (W//2)*Cout) bf16 stride-2 banded matrices."""
    wo = W // 2
    src = jnp.arange(W)[:, None]
    dst = jnp.arange(wo)[None, :]
    mats = []
    for dy in range(2):
        b = 0.0
        for dx in range(2):
            q = (src == 2 * dst + dx).astype(jnp.float32)            # (W, Wo)
            b = b + jnp.kron(q, w[dy, dx])
        mats.append(b)
    return jnp.stack(mats).astype(jnp.bfloat16)


def _row_masks(N, H):
    r = jnp.arange(N * H) % H
    mask_top = (r != 0).astype(jnp.float32)[:, None]                 # (N*H, 1)
    mask_bot = (r != H - 1).astype(jnp.float32)[:, None]
    return mask_top, mask_bot


def _ds_row_select(N, H):
    """(N*Ho, N*H) 0/1 matrix picking input row n*H + 2*ho for output row n*Ho + ho."""
    ho = H // 2
    ro = jnp.arange(N * ho)
    src = (ro // ho) * H + 2 * (ro % ho)
    return (src[:, None] == jnp.arange(N * H)[None, :]).astype(jnp.float32)


def prepare_residual_block(params, N, H, W):
    """One-time preprocessing of module parameters into kernel constants (hoisted
    out of the per-forward path).  Returns (consts, meta)."""
    mask_top, mask_bot = _row_masks(N, H)
    consts = [mask_top, mask_bot]
    plan = []
    c_out = params["layers"][0]["w1"].shape[2]
    for lp in params["layers"]:
        consts += [
            _band3(lp["w1"], W), _tile_c(lp["b1"], W),
            _tile_c(lp["g1"], W), _tile_c(lp["be1"], W),
            _band3(lp["w2"], W), _tile_c(lp["b2"], W),
            _tile_c(lp["g2"], W), _tile_c(lp["be2"], W),
        ]
        has_proj = "wp" in lp
        if has_proj:
            consts += [
                _band3(lp["wp"], W), _tile_c(lp["bp"], W),
                jnp.kron(jnp.eye(W, dtype=jnp.float32), lp["wpr"]).astype(jnp.bfloat16),
                _tile_c(lp["bpr"], W),
            ]
            c_out = lp["wp"].shape[3]
        else:
            c_out = lp["w1"].shape[2]
        plan.append(has_proj)

    has_ds = "ds_w" in params
    if has_ds:
        consts += [_ds_row_select(N, H), _band_ds(params["ds_w"], W),
                   _tile_c(params["ds_b"], W // 2)]
        h_out, w_out = H // 2, W // 2
    else:
        h_out, w_out = H, W

    meta = dict(plan=tuple(plan), has_ds=has_ds, n=N, h=H, w=W,
                h_out=h_out, w_out=w_out, c_out=c_out)
    return consts, meta


def make_block_forward(meta):
    """Builds the jitted forward: NHWC input -> NHWC output via ONE fused pallas_call."""
    n = meta["n"]
    h_out, w_out, c_out = meta["h_out"], meta["w_out"], meta["c_out"]
    kernel = _make_block_kernel(meta["plan"], meta["has_ds"], n)
    out2d_shape = (n * h_out, w_out * c_out)

    def forward(x, consts):
        nb, hh, ww, cin = x.shape
        a2d = x.reshape(nb * hh, ww * cin)        # free row-major reshape -> (N*H, W*Cin)
        out2d = pl.pallas_call(
            kernel,
            out_shape=jax.ShapeDtypeStruct(out2d_shape, jnp.float32),
            grid=(1,),
            in_specs=[_full_spec(a2d.shape)] + [_full_spec(c.shape) for c in consts],
            out_specs=_full_spec(out2d_shape),
            compiler_params=pltpu.CompilerParams(
                dimension_semantics=("arbitrary",),
                # explicit VMEM budget (v7x has 64 MiB/TC; demo footprint is tiny)
                vmem_limit_bytes=32 * 1024 * 1024,
            ),
        )(a2d, *consts)
        return out2d.reshape(n, h_out, w_out, c_out)

    return jax.jit(forward)


# ----------------------------- parameter init + reference --------------------------

def init_params(key, in_ch, out_ch, depth, downsample):
    def normal(k, shape, scale=0.1):
        return scale * jax.random.normal(k, shape, jnp.float32)

    params = {"layers": []}
    for i in range(depth):
        cin = in_ch
        cout = out_ch if i == depth - 1 else in_ch
        key, *ks = jax.random.split(key, 13)
        lp = {
            "w1": normal(ks[0], (3, 3, cin, cin)),
            "b1": normal(ks[1], (cin,)),
            "g1": 1.0 + normal(ks[2], (cin,)),
            "be1": normal(ks[3], (cin,)),
            "w2": normal(ks[4], (3, 3, cin, cin)),
            "b2": normal(ks[5], (cin,)),
            "g2": 1.0 + normal(ks[6], (cin,)),
            "be2": normal(ks[7], (cin,)),
        }
        if cin != cout:
            lp["wp"] = normal(ks[8], (3, 3, cin, cout))    # projection (3x3, pad 1)
            lp["bp"] = normal(ks[9], (cout,))
            lp["wpr"] = normal(ks[10], (cin, cout))        # projection_residual (1x1)
            lp["bpr"] = normal(ks[11], (cout,))
        params["layers"].append(lp)
    if downsample:
        key, k1, k2 = jax.random.split(key, 3)
        params["ds_w"] = normal(k1, (2, 2, out_ch, out_ch))
        params["ds_b"] = normal(k2, (out_ch,))
    return params


def _ref_forward(x, params):
    def conv(x, w, b, stride, pad):
        y = jax.lax.conv_general_dilated(
            x, w, (stride, stride), [(pad, pad), (pad, pad)],
            dimension_numbers=("NHWC", "HWIO", "NHWC"),
            precision=jax.lax.Precision.HIGHEST)
        return y + b.reshape(1, 1, 1, -1)

    def gn(x, g, be):
        m = x.mean(axis=(1, 2, 3), keepdims=True)
        v = ((x - m) ** 2).mean(axis=(1, 2, 3), keepdims=True)
        return (x - m) * jax.lax.rsqrt(v + _EPS) * g.reshape(1, 1, 1, -1) + be.reshape(1, 1, 1, -1)

    relu = lambda t: jnp.maximum(t, 0.0)
    for lp in params["layers"]:
        r = x
        x = relu(gn(conv(x, lp["w1"], lp["b1"], 1, 1), lp["g1"], lp["be1"]))
        x = relu(gn(conv(x, lp["w2"], lp["b2"], 1, 1), lp["g2"], lp["be2"]))
        if "wp" in lp:
            r = conv(r, lp["wpr"].reshape(1, 1, *lp["wpr"].shape), lp["bpr"], 1, 0)
            x = conv(x, lp["wp"], lp["bp"], 1, 1)
        x = relu(x + r)
    if "ds_w" in params:
        x = conv(x, params["ds_w"], params["ds_b"], 2, 0)
    return x


# ----------------------------- main -------------------------------------------------

if __name__ == "__main__":
    N, Cin, Cout, H, W, depth = 2, 4, 8, 16, 16, 2
    key = jax.random.PRNGKey(0)
    k_x, k_p = jax.random.split(key)

    x_nchw = jax.random.normal(k_x, (N, Cin, H, W), jnp.float32)   # PyTorch NCHW input
    x = jnp.transpose(x_nchw, (0, 2, 3, 1))                        # -> NHWC for the kernel

    params = init_params(k_p, Cin, Cout, depth, downsample=True)

    # one-time weight preprocessing (hoisted out of the per-forward path)
    consts, meta = prepare_residual_block(params, N, H, W)
    fwd = make_block_forward(meta)

    y = fwd(x, consts)
    y = jax.block_until_ready(y)

    assert y.shape == (N, H // 2, W // 2, Cout), y.shape
    y_ref = _ref_forward(x, params)
    max_err = float(jnp.max(jnp.abs(y - y_ref)))
    # bf16 MXU operands (f32 accumulation, f32 GN stats) -> slightly looser tolerance
    assert jnp.allclose(y, y_ref, rtol=3e-2, atol=3e-2), max_err

    y_nchw = jnp.transpose(y, (0, 3, 1, 2))   # back to PyTorch NCHW convention
    print("KERNEL_OK")
</pallas_src>

<mosaic_0001>
module attributes {stable_mosaic.version = 11 : i64} {
  func.func @kernel(%arg0: i32, %arg1: memref<32x64xf32, #tpu.memory_space<vmem>>, %arg2: memref<32x1xf32, #tpu.memory_space<vmem>>, %arg3: memref<32x1xf32, #tpu.memory_space<vmem>>, %arg4: memref<3x64x64xbf16, #tpu.memory_space<vmem>>, %arg5: memref<1x64xf32, #tpu.memory_space<vmem>>, %arg6: memref<1x64xf32, #tpu.memory_space<vmem>>, %arg7: memref<1x64xf32, #tpu.memory_space<vmem>>, %arg8: memref<3x64x64xbf16, #tpu.memory_space<vmem>>, %arg9: memref<1x64xf32, #tpu.memory_space<vmem>>, %arg10: memref<1x64xf32, #tpu.memory_space<vmem>>, %arg11: memref<1x64xf32, #tpu.memory_space<vmem>>, %arg12: memref<3x64x64xbf16, #tpu.memory_space<vmem>>, %arg13: memref<1x64xf32, #tpu.memory_space<vmem>>, %arg14: memref<1x64xf32, #tpu.memory_space<vmem>>, %arg15: memref<1x64xf32, #tpu.memory_space<vmem>>, %arg16: memref<3x64x64xbf16, #tpu.memory_space<vmem>>, %arg17: memref<1x64xf32, #tpu.memory_space<vmem>>, %arg18: memref<1x64xf32, #tpu.memory_space<vmem>>, %arg19: memref<1x64xf32, #tpu.memory_space<vmem>>, %arg20: memref<3x64x128xbf16, #tpu.memory_space<vmem>>, %arg21: memref<1x128xf32, #tpu.memory_space<vmem>>, %arg22: memref<64x128xbf16, #tpu.memory_space<vmem>>, %arg23: memref<1x128xf32, #tpu.memory_space<vmem>>, %arg24: memref<16x32xf32, #tpu.memory_space<vmem>>, %arg25: memref<2x128x64xbf16, #tpu.memory_space<vmem>>, %arg26: memref<1x64xf32, #tpu.memory_space<vmem>>, %arg27: memref<16x64xf32, #tpu.memory_space<vmem>>) attributes {dimension_semantics = [#tpu.dimension_semantics<arbitrary>], iteration_bounds = array<i64: 1>, scalar_prefetch = 0 : i64, scratch_operands = 0 : i64, tpu.core_type = #tpu.core_type<tc>, window_params = [{pipeline_mode = #tpu.pipeline_mode<synchronous>, transform_indices = @transform_0, window_bounds = array<i64: 32, 64>}, {pipeline_mode = #tpu.pipeline_mode<synchronous>, transform_indices = @transform_1, window_bounds = array<i64: 32, 1>}, {pipeline_mode = #tpu.pipeline_mode<synchronous>, transform_indices = @transform_2, window_bounds = array<i64: 32, 1>}, {pipeline_mode = #tpu.pipeline_mode<synchronous>, transform_indices = @transform_3, window_bounds = array<i64: 3, 64, 64>}, {pipeline_mode = #tpu.pipeline_mode<synchronous>, transform_indices = @transform_4, window_bounds = array<i64: 1, 64>}, {pipeline_mode = #tpu.pipeline_mode<synchronous>, transform_indices = @transform_5, window_bounds = array<i64: 1, 64>}, {pipeline_mode = #tpu.pipeline_mode<synchronous>, transform_indices = @transform_6, window_bounds = array<i64: 1, 64>}, {pipeline_mode = #tpu.pipeline_mode<synchronous>, transform_indices = @transform_7, window_bounds = array<i64: 3, 64, 64>}, {pipeline_mode = #tpu.pipeline_mode<synchronous>, transform_indices = @transform_8, window_bounds = array<i64: 1, 64>}, {pipeline_mode = #tpu.pipeline_mode<synchronous>, transform_indices = @transform_9, window_bounds = array<i64: 1, 64>}, {pipeline_mode = #tpu.pipeline_mode<synchronous>, transform_indices = @transform_10, window_bounds = array<i64: 1, 64>}, {pipeline_mode = #tpu.pipeline_mode<synchronous>, transform_indices = @transform_11, window_bounds = array<i64: 3, 64, 64>}, {pipeline_mode = #tpu.pipeline_mode<synchronous>, transform_indices = @transform_12, window_bounds = array<i64: 1, 64>}, {pipeline_mode = #tpu.pipeline_mode<synchronous>, transform_indices = @transform_13, window_bounds = array<i64: 1, 64>}, {pipeline_mode = #tpu.pipeline_mode<synchronous>, transform_indices = @transform_14, window_bounds = array<i64: 1, 64>}, {pipeline_mode = #tpu.pipeline_mode<synchronous>, transform_indices = @transform_15, window_bounds = array<i64: 3, 64, 64>}, {pipeline_mode = #tpu.pipeline_mode<synchronous>, transform_indices = @transform_16, window_bounds = array<i64: 1, 64>}, {pipeline_mode = #tpu.pipeline_mode<synchronous>, transform_indices = @transform_17, window_bounds = array<i64: 1, 64>}, {pipeline_mode = #tpu.pipeline_mode<synchronous>, transform_indices = @transform_18, window_bounds = array<i64: 1, 64>}, {pipeline_mode = #tpu.pipeline_mode<synchronous>, transform_indices = @transform_19, window_bounds = array<i64: 3, 64, 128>}, {pipeline_mode = #tpu.pipeline_mode<synchronous>, transform_indices = @transform_20, window_bounds = array<i64: 1, 128>}, {pipeline_mode = #tpu.pipeline_mode<synchronous>, transform_indices = @transform_21, window_bounds = array<i64: 64, 128>}, {pipeline_mode = #tpu.pipeline_mode<synchronous>, transform_indices = @transform_22, window_bounds = array<i64: 1, 128>}, {pipeline_mode = #tpu.pipeline_mode<synchronous>, transform_indices = @transform_23, window_bounds = array<i64: 16, 32>}, {pipeline_mode = #tpu.pipeline_mode<synchronous>, transform_indices = @transform_24, window_bounds = array<i64: 2, 128, 64>}, {pipeline_mode = #tpu.pipeline_mode<synchronous>, transform_indices = @transform_25, window_bounds = array<i64: 1, 64>}, {pipeline_mode = #tpu.pipeline_mode<synchronous>, transform_indices = @transform_26, window_bounds = array<i64: 16, 64>}]} {
    %c0 = arith.constant 0 : index
    %c0_0 = arith.constant 0 : index
    %0 = vector.load %arg2[%c0, %c0_0] : memref<32x1xf32, #tpu.memory_space<vmem>>, vector<32x1xf32>
    %c0_1 = arith.constant 0 : index
    %c0_2 = arith.constant 0 : index
    %1 = vector.load %arg3[%c0_1, %c0_2] : memref<32x1xf32, #tpu.memory_space<vmem>>, vector<32x1xf32>
    %c0_3 = arith.constant 0 : index
    %c0_4 = arith.constant 0 : index
    %2 = vector.load %arg1[%c0_3, %c0_4] : memref<32x64xf32, #tpu.memory_space<vmem>>, vector<32x64xf32>
    %c0_5 = arith.constant 0 : index
    %c0_6 = arith.constant 0 : index
    %3 = vector.load %arg5[%c0_5, %c0_6] : memref<1x64xf32, #tpu.memory_space<vmem>>, vector<1x64xf32>
    %c0_7 = arith.constant 0 : index
    %c0_8 = arith.constant 0 : index
    %4 = vector.load %arg6[%c0_7, %c0_8] : memref<1x64xf32, #tpu.memory_space<vmem>>, vector<1x64xf32>
    %c0_9 = arith.constant 0 : index
    %c0_10 = arith.constant 0 : index
    %5 = vector.load %arg7[%c0_9, %c0_10] : memref<1x64xf32, #tpu.memory_space<vmem>>, vector<1x64xf32>
    %c0_11 = arith.constant 0 : index
    %c0_12 = arith.constant 0 : index
    %6 = vector.load %arg9[%c0_11, %c0_12] : memref<1x64xf32, #tpu.memory_space<vmem>>, vector<1x64xf32>
    %c0_13 = arith.constant 0 : index
    %c0_14 = arith.constant 0 : index
    %7 = vector.load %arg10[%c0_13, %c0_14] : memref<1x64xf32, #tpu.memory_space<vmem>>, vector<1x64xf32>
    %c0_15 = arith.constant 0 : index
    %c0_16 = arith.constant 0 : index
    %8 = vector.load %arg11[%c0_15, %c0_16] : memref<1x64xf32, #tpu.memory_space<vmem>>, vector<1x64xf32>
    %c1_i32 = arith.constant 1 : i32
    %9 = tpu.dynamic_rotate %2 by %c1_i32 dim 0 : vector<32x64xf32>, i32 -> vector<32x64xf32>
    %10 = vector.broadcast %0 : vector<32x1xf32> to vector<32x64xf32>
    %11 = arith.mulf %9, %10 : vector<32x64xf32>
    %c31_i32 = arith.constant 31 : i32
    %12 = tpu.dynamic_rotate %2 by %c31_i32 dim 0 : vector<32x64xf32>, i32 -> vector<32x64xf32>
    %13 = vector.broadcast %1 : vector<32x1xf32> to vector<32x64xf32>
    %14 = arith.mulf %12, %13 : vector<32x64xf32>
    %15 = arith.truncf %11 : vector<32x64xf32> to vector<32x64xbf16>
    %c0_17 = arith.constant 0 : index
    %c0_18 = arith.constant 0 : index
    %c0_19 = arith.constant 0 : index
    %16 = vector.load %arg4[%c0_17, %c0_18, %c0_19] : memref<3x64x64xbf16, #tpu.memory_space<vmem>>, vector<1x64x64xbf16>
    %17 = vector.shape_cast %16 : vector<1x64x64xbf16> to vector<64x64xbf16>
    %cst = arith.constant dense<0.000000e+00> : vector<32x64xf32>
    %18 = tpu.matmul %15, %17, %cst {dimension_numbers = #tpu.dot_dimension_numbers<[1], [0], [0], [1], [0, 0, 1, 1], [], []>} : vector<32x64xbf16>, vector<64x64xbf16>, vector<32x64xf32> -> vector<32x64xf32>
    %19 = arith.truncf %2 : vector<32x64xf32> to vector<32x64xbf16>
    %c1 = arith.constant 1 : index
    %c0_20 = arith.constant 0 : index
    %c0_21 = arith.constant 0 : index
    %20 = vector.load %arg4[%c1, %c0_20, %c0_21] : memref<3x64x64xbf16, #tpu.memory_space<vmem>>, vector<1x64x64xbf16>
    %21 = vector.shape_cast %20 : vector<1x64x64xbf16> to vector<64x64xbf16>
    %cst_22 = arith.constant dense<0.000000e+00> : vector<32x64xf32>
    %22 = tpu.matmul %19, %21, %cst_22 {dimension_numbers = #tpu.dot_dimension_numbers<[1], [0], [0], [1], [0, 0, 1, 1], [], []>} : vector<32x64xbf16>, vector<64x64xbf16>, vector<32x64xf32> -> vector<32x64xf32>
    %23 = arith.addf %18, %22 : vector<32x64xf32>
    %24 = arith.truncf %14 : vector<32x64xf32> to vector<32x64xbf16>
    %c2 = arith.constant 2 : index
    %c0_23 = arith.constant 0 : index
    %c0_24 = arith.constant 0 : index
    %25 = vector.load %arg4[%c2, %c0_23, %c0_24] : memref<3x64x64xbf16, #tpu.memory_space<vmem>>, vector<1x64x64xbf16>
    %26 = vector.shape_cast %25 : vector<1x64x64xbf16> to vector<64x64xbf16>
    %cst_25 = arith.constant dense<0.000000e+00> : vector<32x64xf32>
    %27 = tpu.matmul %24, %26, %cst_25 {dimension_numbers = #tpu.dot_dimension_numbers<[1], [0], [0], [1], [0, 0, 1, 1], [], []>} : vector<32x64xbf16>, vector<64x64xbf16>, vector<32x64xf32> -> vector<32x64xf32>
    %28 = arith.addf %23, %27 : vector<32x64xf32>
    %29 = vector.broadcast %3 : vector<1x64xf32> to vector<32x64xf32>
    %30 = arith.addf %28, %29 : vector<32x64xf32>
    %31 = vector.extract_strided_slice %30 {offsets = [0, 0], sizes = [16, 64], strides = [1, 1]} : vector<32x64xf32> to vector<16x64xf32>
    %32 = vector.shape_cast %31 : vector<16x64xf32> to vector<1x16x64xf32>
    %cst_26 = arith.constant dense<0.000000e+00> : vector<1xf32>
    %33 = vector.multi_reduction <add>, %32, %cst_26 [1, 2] : vector<1x16x64xf32> to vector<1xf32>
    %34 = vector.shape_cast %33 : vector<1xf32> to vector<1x1x1xf32>
    %35 = vector.extract %34[0, 0, 0] : f32 from vector<1x1x1xf32>
    %cst_27 = arith.constant 1.024000e+03 : f32
    %36 = arith.divf %35, %cst_27 : f32
    %37 = vector.broadcast %36 : f32 to vector<16x64xf32>
    %38 = arith.subf %31, %37 : vector<16x64xf32>
    %39 = arith.mulf %38, %38 : vector<16x64xf32>
    %40 = vector.shape_cast %39 : vector<16x64xf32> to vector<1x16x64xf32>
    %cst_28 = arith.constant dense<0.000000e+00> : vector<1xf32>
    %41 = vector.multi_reduction <add>, %40, %cst_28 [1, 2] : vector<1x16x64xf32> to vector<1xf32>
    %42 = vector.shape_cast %41 : vector<1xf32> to vector<1x1x1xf32>
    %43 = vector.extract %42[0, 0, 0] : f32 from vector<1x1x1xf32>
    %cst_29 = arith.constant 1.024000e+03 : f32
    %44 = arith.divf %43, %cst_29 : f32
    %cst_30 = arith.constant 9.99999974E-6 : f32
    %45 = arith.addf %44, %cst_30 : f32
    %46 = math.rsqrt %45 : f32
    %47 = vector.broadcast %46 : f32 to vector<16x64xf32>
    %48 = arith.mulf %38, %47 : vector<16x64xf32>
    %49 = vector.extract_strided_slice %30 {offsets = [16, 0], sizes = [16, 64], strides = [1, 1]} : vector<32x64xf32> to vector<16x64xf32>
    %50 = vector.shape_cast %49 : vector<16x64xf32> to vector<1x16x64xf32>
    %cst_31 = arith.constant dense<0.000000e+00> : vector<1xf32>
    %51 = vector.multi_reduction <add>, %50, %cst_31 [1, 2] : vector<1x16x64xf32> to vector<1xf32>
    %52 = vector.shape_cast %51 : vector<1xf32> to vector<1x1x1xf32>
    %53 = vector.extract %52[0, 0, 0] : f32 from vector<1x1x1xf32>
    %cst_32 = arith.constant 1.024000e+03 : f32
    %54 = arith.divf %53, %cst_32 : f32
    %55 = vector.broadcast %54 : f32 to vector<16x64xf32>
    %56 = arith.subf %49, %55 : vector<16x64xf32>
    %57 = arith.mulf %56, %56 : vector<16x64xf32>
    %58 = vector.shape_cast %57 : vector<16x64xf32> to vector<1x16x64xf32>
    %cst_33 = arith.constant dense<0.000000e+00> : vector<1xf32>
    %59 = vector.multi_reduction <add>, %58, %cst_33 [1, 2] : vector<1x16x64xf32> to vector<1xf32>
    %60 = vector.shape_cast %59 : vector<1xf32> to vector<1x1x1xf32>
    %61 = vector.extract %60[0, 0, 0] : f32 from vector<1x1x1xf32>
    %cst_34 = arith.constant 1.024000e+03 : f32
    %62 = arith.divf %61, %cst_34 : f32
    %cst_35 = arith.constant 9.99999974E-6 : f32
    %63 = arith.addf %62, %cst_35 : f32
    %64 = math.rsqrt %63 : f32
    %65 = vector.broadcast %64 : f32 to vector<16x64xf32>
    %66 = arith.mulf %56, %65 : vector<16x64xf32>
    %67 = tpu.concatenate %48, %66 in 0 : vector<16x64xf32>, vector<16x64xf32> -> vector<32x64xf32>
    %68 = vector.broadcast %4 : vector<1x64xf32> to vector<32x64xf32>
    %69 = arith.mulf %67, %68 : vector<32x64xf32>
    %70 = vector.broadcast %5 : vector<1x64xf32> to vector<32x64xf32>
    %71 = arith.addf %69, %70 : vector<32x64xf32>
    %cst_36 = arith.constant 0.000000e+00 : f32
    %72 = vector.broadcast %cst_36 : f32 to vector<32x64xf32>
    %73 = arith.maximumf %71, %72 : vector<32x64xf32>
    %c1_i32_37 = arith.constant 1 : i32
    %74 = tpu.dynamic_rotate %73 by %c1_i32_37 dim 0 : vector<32x64xf32>, i32 -> vector<32x64xf32>
    %75 = vector.broadcast %0 : vector<32x1xf32> to vector<32x64xf32>
    %76 = arith.mulf %74, %75 : vector<32x64xf32>
    %c31_i32_38 = arith.constant 31 : i32
    %77 = tpu.dynamic_rotate %73 by %c31_i32_38 dim 0 : vector<32x64xf32>, i32 -> vector<32x64xf32>
    %78 = vector.broadcast %1 : vector<32x1xf32> to vector<32x64xf32>
    %79 = arith.mulf %77, %78 : vector<32x64xf32>
    %80 = arith.truncf %76 : vector<32x64xf32> to vector<32x64xbf16>
    %c0_39 = arith.constant 0 : index
    %c0_40 = arith.constant 0 : index
    %c0_41 = arith.constant 0 : index
    %81 = vector.load %arg8[%c0_39, %c0_40, %c0_41] : memref<3x64x64xbf16, #tpu.memory_space<vmem>>, vector<1x64x64xbf16>
    %82 = vector.shape_cast %81 : vector<1x64x64xbf16> to vector<64x64xbf16>
    %cst_42 = arith.constant dense<0.000000e+00> : vector<32x64xf32>
    %83 = tpu.matmul %80, %82, %cst_42 {dimension_numbers = #tpu.dot_dimension_numbers<[1], [0], [0], [1], [0, 0, 1, 1], [], []>} : vector<32x64xbf16>, vector<64x64xbf16>, vector<32x64xf32> -> vector<32x64xf32>
    %84 = arith.truncf %73 : vector<32x64xf32> to vector<32x64xbf16>
    %c1_43 = arith.constant 1 : index
    %c0_44 = arith.constant 0 : index
    %c0_45 = arith.constant 0 : index
    %85 = vector.load %arg8[%c1_43, %c0_44, %c0_45] : memref<3x64x64xbf16, #tpu.memory_space<vmem>>, vector<1x64x64xbf16>
    %86 = vector.shape_cast %85 : vector<1x64x64xbf16> to vector<64x64xbf16>
    %cst_46 = arith.constant dense<0.000000e+00> : vector<32x64xf32>
    %87 = tpu.matmul %84, %86, %cst_46 {dimension_numbers = #tpu.dot_dimension_numbers<[1], [0], [0], [1], [0, 0, 1, 1], [], []>} : vector<32x64xbf16>, vector<64x64xbf16>, vector<32x64xf32> -> vector<32x64xf32>
    %88 = arith.addf %83, %87 : vector<32x64xf32>
    %89 = arith.truncf %79 : vector<32x64xf32> to vector<32x64xbf16>
    %c2_47 = arith.constant 2 : index
    %c0_48 = arith.constant 0 : index
    %c0_49 = arith.constant 0 : index
    %90 = vector.load %arg8[%c2_47, %c0_48, %c0_49] : memref<3x64x64xbf16, #tpu.memory_space<vmem>>, vector<1x64x64xbf16>
    %91 = vector.shape_cast %90 : vector<1x64x64xbf16> to vector<64x64xbf16>
    %cst_50 = arith.constant dense<0.000000e+00> : vector<32x64xf32>
    %92 = tpu.matmul %89, %91, %cst_50 {dimension_numbers = #tpu.dot_dimension_numbers<[1], [0], [0], [1], [0, 0, 1, 1], [], []>} : vector<32x64xbf16>, vector<64x64xbf16>, vector<32x64xf32> -> vector<32x64xf32>
    %93 = arith.addf %88, %92 : vector<32x64xf32>
    %94 = vector.broadcast %6 : vector<1x64xf32> to vector<32x64xf32>
    %95 = arith.addf %93, %94 : vector<32x64xf32>
    %96 = vector.extract_strided_slice %95 {offsets = [0, 0], sizes = [16, 64], strides = [1, 1]} : vector<32x64xf32> to vector<16x64xf32>
    %97 = vector.shape_cast %96 : vector<16x64xf32> to vector<1x16x64xf32>
    %cst_51 = arith.constant dense<0.000000e+00> : vector<1xf32>
    %98 = vector.multi_reduction <add>, %97, %cst_51 [1, 2] : vector<1x16x64xf32> to vector<1xf32>
    %99 = vector.shape_cast %98 : vector<1xf32> to vector<1x1x1xf32>
    %100 = vector.extract %99[0, 0, 0] : f32 from vector<1x1x1xf32>
    %cst_52 = arith.constant 1.024000e+03 : f32
    %101 = arith.divf %100, %cst_52 : f32
    %102 = vector.broadcast %101 : f32 to vector<16x64xf32>
    %103 = arith.subf %96, %102 : vector<16x64xf32>
    %104 = arith.mulf %103, %103 : vector<16x64xf32>
    %105 = vector.shape_cast %104 : vector<16x64xf32> to vector<1x16x64xf32>
    %cst_53 = arith.constant dense<0.000000e+00> : vector<1xf32>
    %106 = vector.multi_reduction <add>, %105, %cst_53 [1, 2] : vector<1x16x64xf32> to vector<1xf32>
    %107 = vector.shape_cast %106 : vector<1xf32> to vector<1x1x1xf32>
    %108 = vector.extract %107[0, 0, 0] : f32 from vector<1x1x1xf32>
    %cst_54 = arith.constant 1.024000e+03 : f32
    %109 = arith.divf %108, %cst_54 : f32
    %cst_55 = arith.constant 9.99999974E-6 : f32
    %110 = arith.addf %109, %cst_55 : f32
    %111 = math.rsqrt %110 : f32
    %112 = vector.broadcast %111 : f32 to vector<16x64xf32>
    %113 = arith.mulf %103, %112 : vector<16x64xf32>
    %114 = vector.extract_strided_slice %95 {offsets = [16, 0], sizes = [16, 64], strides = [1, 1]} : vector<32x64xf32> to vector<16x64xf32>
    %115 = vector.shape_cast %114 : vector<16x64xf32> to vector<1x16x64xf32>
    %cst_56 = arith.constant dense<0.000000e+00> : vector<1xf32>
    %116 = vector.multi_reduction <add>, %115, %cst_56 [1, 2] : vector<1x16x64xf32> to vector<1xf32>
    %117 = vector.shape_cast %116 : vector<1xf32> to vector<1x1x1xf32>
    %118 = vector.extract %117[0, 0, 0] : f32 from vector<1x1x1xf32>
    %cst_57 = arith.constant 1.024000e+03 : f32
    %119 = arith.divf %118, %cst_57 : f32
    %120 = vector.broadcast %119 : f32 to vector<16x64xf32>
    %121 = arith.subf %114, %120 : vector<16x64xf32>
    %122 = arith.mulf %121, %121 : vector<16x64xf32>
    %123 = vector.shape_cast %122 : vector<16x64xf32> to vector<1x16x64xf32>
    %cst_58 = arith.constant dense<0.000000e+00> : vector<1xf32>
    %124 = vector.multi_reduction <add>, %123, %cst_58 [1, 2] : vector<1x16x64xf32> to vector<1xf32>
    %125 = vector.shape_cast %124 : vector<1xf32> to vector<1x1x1xf32>
    %126 = vector.extract %125[0, 0, 0] : f32 from vector<1x1x1xf32>
    %cst_59 = arith.constant 1.024000e+03 : f32
    %127 = arith.divf %126, %cst_59 : f32
    %cst_60 = arith.constant 9.99999974E-6 : f32
    %128 = arith.addf %127, %cst_60 : f32
    %129 = math.rsqrt %128 : f32
    %130 = vector.broadcast %129 : f32 to vector<16x64xf32>
    %131 = arith.mulf %121, %130 : vector<16x64xf32>
    %132 = tpu.concatenate %113, %131 in 0 : vector<16x64xf32>, vector<16x64xf32> -> vector<32x64xf32>
    %133 = vector.broadcast %7 : vector<1x64xf32> to vector<32x64xf32>
    %134 = arith.mulf %132, %133 : vector<32x64xf32>
    %135 = vector.broadcast %8 : vector<1x64xf32> to vector<32x64xf32>
    %136 = arith.addf %134, %135 : vector<32x64xf32>
    %cst_61 = arith.constant 0.000000e+00 : f32
    %137 = vector.broadcast %cst_61 : f32 to vector<32x64xf32>
    %138 = arith.maximumf %136, %137 : vector<32x64xf32>
    %139 = arith.addf %138, %2 : vector<32x64xf32>
    %cst_62 = arith.constant 0.000000e+00 : f32
    %140 = vector.broadcast %cst_62 : f32 to vector<32x64xf32>
    %141 = arith.maximumf %139, %140 : vector<32x64xf32>
    %c0_63 = arith.constant 0 : index
    %c0_64 = arith.constant 0 : index
    %142 = vector.load %arg13[%c0_63, %c0_64] : memref<1x64xf32, #tpu.memory_space<vmem>>, vector<1x64xf32>
    %c0_65 = arith.constant 0 : index
    %c0_66 = arith.constant 0 : index
    %143 = vector.load %arg14[%c0_65, %c0_66] : memref<1x64xf32, #tpu.memory_space<vmem>>, vector<1x64xf32>
    %c0_67 = arith.constant 0 : index
    %c0_68 = arith.constant 0 : index
    %144 = vector.load %arg15[%c0_67, %c0_68] : memref<1x64xf32, #tpu.memory_space<vmem>>, vector<1x64xf32>
    %c0_69 = arith.constant 0 : index
    %c0_70 = arith.constant 0 : index
    %145 = vector.load %arg17[%c0_69, %c0_70] : memref<1x64xf32, #tpu.memory_space<vmem>>, vector<1x64xf32>
    %c0_71 = arith.constant 0 : index
    %c0_72 = arith.constant 0 : index
    %146 = vector.load %arg18[%c0_71, %c0_72] : memref<1x64xf32, #tpu.memory_space<vmem>>, vector<1x64xf32>
    %c0_73 = arith.constant 0 : index
    %c0_74 = arith.constant 0 : index
    %147 = vector.load %arg19[%c0_73, %c0_74] : memref<1x64xf32, #tpu.memory_space<vmem>>, vector<1x64xf32>
    %c1_i32_75 = arith.constant 1 : i32
    %148 = tpu.dynamic_rotate %141 by %c1_i32_75 dim 0 : vector<32x64xf32>, i32 -> vector<32x64xf32>
    %149 = vector.broadcast %0 : vector<32x1xf32> to vector<32x64xf32>
    %150 = arith.mulf %148, %149 : vector<32x64xf32>
    %c31_i32_76 = arith.constant 31 : i32
    %151 = tpu.dynamic_rotate %141 by %c31_i32_76 dim 0 : vector<32x64xf32>, i32 -> vector<32x64xf32>
    %152 = vector.broadcast %1 : vector<32x1xf32> to vector<32x64xf32>
    %153 = arith.mulf %151, %152 : vector<32x64xf32>
    %154 = arith.truncf %150 : vector<32x64xf32> to vector<32x64xbf16>
    %c0_77 = arith.constant 0 : index
    %c0_78 = arith.constant 0 : index
    %c0_79 = arith.constant 0 : index
    %155 = vector.load %arg12[%c0_77, %c0_78, %c0_79] : memref<3x64x64xbf16, #tpu.memory_space<vmem>>, vector<1x64x64xbf16>
    %156 = vector.shape_cast %155 : vector<1x64x64xbf16> to vector<64x64xbf16>
    %cst_80 = arith.constant dense<0.000000e+00> : vector<32x64xf32>
    %157 = tpu.matmul %154, %156, %cst_80 {dimension_numbers = #tpu.dot_dimension_numbers<[1], [0], [0], [1], [0, 0, 1, 1], [], []>} : vector<32x64xbf16>, vector<64x64xbf16>, vector<32x64xf32> -> vector<32x64xf32>
    %158 = arith.truncf %141 : vector<32x64xf32> to vector<32x64xbf16>
    %c1_81 = arith.constant 1 : index
    %c0_82 = arith.constant 0 : index
    %c0_83 = arith.constant 0 : index
    %159 = vector.load %arg12[%c1_81, %c0_82, %c0_83] : memref<3x64x64xbf16, #tpu.memory_space<vmem>>, vector<1x64x64xbf16>
    %160 = vector.shape_cast %159 : vector<1x64x64xbf16> to vector<64x64xbf16>
    %cst_84 = arith.constant dense<0.000000e+00> : vector<32x64xf32>
    %161 = tpu.matmul %158, %160, %cst_84 {dimension_numbers = #tpu.dot_dimension_numbers<[1], [0], [0], [1], [0, 0, 1, 1], [], []>} : vector<32x64xbf16>, vector<64x64xbf16>, vector<32x64xf32> -> vector<32x64xf32>
    %162 = arith.addf %157, %161 : vector<32x64xf32>
    %163 = arith.truncf %153 : vector<32x64xf32> to vector<32x64xbf16>
    %c2_85 = arith.constant 2 : index
    %c0_86 = arith.constant 0 : index
    %c0_87 = arith.constant 0 : index
    %164 = vector.load %arg12[%c2_85, %c0_86, %c0_87] : memref<3x64x64xbf16, #tpu.memory_space<vmem>>, vector<1x64x64xbf16>
    %165 = vector.shape_cast %164 : vector<1x64x64xbf16> to vector<64x64xbf16>
    %cst_88 = arith.constant dense<0.000000e+00> : vector<32x64xf32>
    %166 = tpu.matmul %163, %165, %cst_88 {dimension_numbers = #tpu.dot_dimension_numbers<[1], [0], [0], [1], [0, 0, 1, 1], [], []>} : vector<32x64xbf16>, vector<64x64xbf16>, vector<32x64xf32> -> vector<32x64xf32>
    %167 = arith.addf %162, %166 : vector<32x64xf32>
    %168 = vector.broadcast %142 : vector<1x64xf32> to vector<32x64xf32>
    %169 = arith.addf %167, %168 : vector<32x64xf32>
    %170 = vector.extract_strided_slice %169 {offsets = [0, 0], sizes = [16, 64], strides = [1, 1]} : vector<32x64xf32> to vector<16x64xf32>
    %171 = vector.shape_cast %170 : vector<16x64xf32> to vector<1x16x64xf32>
    %cst_89 = arith.constant dense<0.000000e+00> : vector<1xf32>
    %172 = vector.multi_reduction <add>, %171, %cst_89 [1, 2] : vector<1x16x64xf32> to vector<1xf32>
    %173 = vector.shape_cast %172 : vector<1xf32> to vector<1x1x1xf32>
    %174 = vector.extract %173[0, 0, 0] : f32 from vector<1x1x1xf32>
    %cst_90 = arith.constant 1.024000e+03 : f32
    %175 = arith.divf %174, %cst_90 : f32
    %176 = vector.broadcast %175 : f32 to vector<16x64xf32>
    %177 = arith.subf %170, %176 : vector<16x64xf32>
    %178 = arith.mulf %177, %177 : vector<16x64xf32>
    %179 = vector.shape_cast %178 : vector<16x64xf32> to vector<1x16x64xf32>
    %cst_91 = arith.constant dense<0.000000e+00> : vector<1xf32>
    %180 = vector.multi_reduction <add>, %179, %cst_91 [1, 2] : vector<1x16x64xf32> to vector<1xf32>
    %181 = vector.shape_cast %180 : vector<1xf32> to vector<1x1x1xf32>
    %182 = vector.extract %181[0, 0, 0] : f32 from vector<1x1x1xf32>
    %cst_92 = arith.constant 1.024000e+03 : f32
    %183 = arith.divf %182, %cst_92 : f32
    %cst_93 = arith.constant 9.99999974E-6 : f32
    %184 = arith.addf %183, %cst_93 : f32
    %185 = math.rsqrt %184 : f32
    %186 = vector.broadcast %185 : f32 to vector<16x64xf32>
    %187 = arith.mulf %177, %186 : vector<16x64xf32>
    %188 = vector.extract_strided_slice %169 {offsets = [16, 0], sizes = [16, 64], strides = [1, 1]} : vector<32x64xf32> to vector<16x64xf32>
    %189 = vector.shape_cast %188 : vector<16x64xf32> to vector<1x16x64xf32>
    %cst_94 = arith.constant dense<0.000000e+00> : vector<1xf32>
    %190 = vector.multi_reduction <add>, %189, %cst_94 [1, 2] : vector<1x16x64xf32> to vector<1xf32>
    %191 = vector.shape_cast %190 : vector<1xf32> to vector<1x1x1xf32>
    %192 = vector.extract %191[0, 0, 0] : f32 from vector<1x1x1xf32>
    %cst_95 = arith.constant 1.024000e+03 : f32
    %193 = arith.divf %192, %cst_95 : f32
    %194 = vector.broadcast %193 : f32 to vector<16x64xf32>
    %195 = arith.subf %188, %194 : vector<16x64xf32>
    %196 = arith.mulf %195, %195 : vector<16x64xf32>
    %197 = vector.shape_cast %196 : vector<16x64xf32> to vector<1x16x64xf32>
    %cst_96 = arith.constant dense<0.000000e+00> : vector<1xf32>
    %198 = vector.multi_reduction <add>, %197, %cst_96 [1, 2] : vector<1x16x64xf32> to vector<1xf32>
    %199 = vector.shape_cast %198 : vector<1xf32> to vector<1x1x1xf32>
    %200 = vector.extract %199[0, 0, 0] : f32 from vector<1x1x1xf32>
    %cst_97 = arith.constant 1.024000e+03 : f32
    %201 = arith.divf %200, %cst_97 : f32
    %cst_98 = arith.constant 9.99999974E-6 : f32
    %202 = arith.addf %201, %cst_98 : f32
    %203 = math.rsqrt %202 : f32
    %204 = vector.broadcast %203 : f32 to vector<16x64xf32>
    %205 = arith.mulf %195, %204 : vector<16x64xf32>
    %206 = tpu.concatenate %187, %205 in 0 : vector<16x64xf32>, vector<16x64xf32> -> vector<32x64xf32>
    %207 = vector.broadcast %143 : vector<1x64xf32> to vector<32x64xf32>
    %208 = arith.mulf %206, %207 : vector<32x64xf32>
    %209 = vector.broadcast %144 : vector<1x64xf32> to vector<32x64xf32>
    %210 = arith.addf %208, %209 : vector<32x64xf32>
    %cst_99 = arith.constant 0.000000e+00 : f32
    %211 = vector.broadcast %cst_99 : f32 to vector<32x64xf32>
    %212 = arith.maximumf %210, %211 : vector<32x64xf32>
    %c1_i32_100 = arith.constant 1 : i32
    %213 = tpu.dynamic_rotate %212 by %c1_i32_100 dim 0 : vector<32x64xf32>, i32 -> vector<32x64xf32>
    %214 = vector.broadcast %0 : vector<32x1xf32> to vector<32x64xf32>
    %215 = arith.mulf %213, %214 : vector<32x64xf32>
    %c31_i32_101 = arith.constant 31 : i32
    %216 = tpu.dynamic_rotate %212 by %c31_i32_101 dim 0 : vector<32x64xf32>, i32 -> vector<32x64xf32>
    %217 = vector.broadcast %1 : vector<32x1xf32> to vector<32x64xf32>
    %218 = arith.mulf %216, %217 : vector<32x64xf32>
    %219 = arith.truncf %215 : vector<32x64xf32> to vector<32x64xbf16>
    %c0_102 = arith.constant 0 : index
    %c0_103 = arith.constant 0 : index
    %c0_104 = arith.constant 0 : index
    %220 = vector.load %arg16[%c0_102, %c0_103, %c0_104] : memref<3x64x64xbf16, #tpu.memory_space<vmem>>, vector<1x64x64xbf16>
    %221 = vector.shape_cast %220 : vector<1x64x64xbf16> to vector<64x64xbf16>
    %cst_105 = arith.constant dense<0.000000e+00> : vector<32x64xf32>
    %222 = tpu.matmul %219, %221, %cst_105 {dimension_numbers = #tpu.dot_dimension_numbers<[1], [0], [0], [1], [0, 0, 1, 1], [], []>} : vector<32x64xbf16>, vector<64x64xbf16>, vector<32x64xf32> -> vector<32x64xf32>
    %223 = arith.truncf %212 : vector<32x64xf32> to vector<32x64xbf16>
    %c1_106 = arith.constant 1 : index
    %c0_107 = arith.constant 0 : index
    %c0_108 = arith.constant 0 : index
    %224 = vector.load %arg16[%c1_106, %c0_107, %c0_108] : memref<3x64x64xbf16, #tpu.memory_space<vmem>>, vector<1x64x64xbf16>
    %225 = vector.shape_cast %224 : vector<1x64x64xbf16> to vector<64x64xbf16>
    %cst_109 = arith.constant dense<0.000000e+00> : vector<32x64xf32>
    %226 = tpu.matmul %223, %225, %cst_109 {dimension_numbers = #tpu.dot_dimension_numbers<[1], [0], [0], [1], [0, 0, 1, 1], [], []>} : vector<32x64xbf16>, vector<64x64xbf16>, vector<32x64xf32> -> vector<32x64xf32>
    %227 = arith.addf %222, %226 : vector<32x64xf32>
    %228 = arith.truncf %218 : vector<32x64xf32> to vector<32x64xbf16>
    %c2_110 = arith.constant 2 : index
    %c0_111 = arith.constant 0 : index
    %c0_112 = arith.constant 0 : index
    %229 = vector.load %arg16[%c2_110, %c0_111, %c0_112] : memref<3x64x64xbf16, #tpu.memory_space<vmem>>, vector<1x64x64xbf16>
    %230 = vector.shape_cast %229 : vector<1x64x64xbf16> to vector<64x64xbf16>
    %cst_113 = arith.constant dense<0.000000e+00> : vector<32x64xf32>
    %231 = tpu.matmul %228, %230, %cst_113 {dimension_numbers = #tpu.dot_dimension_numbers<[1], [0], [0], [1], [0, 0, 1, 1], [], []>} : vector<32x64xbf16>, vector<64x64xbf16>, vector<32x64xf32> -> vector<32x64xf32>
    %232 = arith.addf %227, %231 : vector<32x64xf32>
    %233 = vector.broadcast %145 : vector<1x64xf32> to vector<32x64xf32>
    %234 = arith.addf %232, %233 : vector<32x64xf32>
    %235 = vector.extract_strided_slice %234 {offsets = [0, 0], sizes = [16, 64], strides = [1, 1]} : vector<32x64xf32> to vector<16x64xf32>
    %236 = vector.shape_cast %235 : vector<16x64xf32> to vector<1x16x64xf32>
    %cst_114 = arith.constant dense<0.000000e+00> : vector<1xf32>
    %237 = vector.multi_reduction <add>, %236, %cst_114 [1, 2] : vector<1x16x64xf32> to vector<1xf32>
    %238 = vector.shape_cast %237 : vector<1xf32> to vector<1x1x1xf32>
    %239 = vector.extract %238[0, 0, 0] : f32 from vector<1x1x1xf32>
    %cst_115 = arith.constant 1.024000e+03 : f32
    %240 = arith.divf %239, %cst_115 : f32
    %241 = vector.broadcast %240 : f32 to vector<16x64xf32>
    %242 = arith.subf %235, %241 : vector<16x64xf32>
    %243 = arith.mulf %242, %242 : vector<16x64xf32>
    %244 = vector.shape_cast %243 : vector<16x64xf32> to vector<1x16x64xf32>
    %cst_116 = arith.constant dense<0.000000e+00> : vector<1xf32>
    %245 = vector.multi_reduction <add>, %244, %cst_116 [1, 2] : vector<1x16x64xf32> to vector<1xf32>
    %246 = vector.shape_cast %245 : vector<1xf32> to vector<1x1x1xf32>
    %247 = vector.extract %246[0, 0, 0] : f32 from vector<1x1x1xf32>
    %cst_117 = arith.constant 1.024000e+03 : f32
    %248 = arith.divf %247, %cst_117 : f32
    %cst_118 = arith.constant 9.99999974E-6 : f32
    %249 = arith.addf %248, %cst_118 : f32
    %250 = math.rsqrt %249 : f32
    %251 = vector.broadcast %250 : f32 to vector<16x64xf32>
    %252 = arith.mulf %242, %251 : vector<16x64xf32>
    %253 = vector.extract_strided_slice %234 {offsets = [16, 0], sizes = [16, 64], strides = [1, 1]} : vector<32x64xf32> to vector<16x64xf32>
    %254 = vector.shape_cast %253 : vector<16x64xf32> to vector<1x16x64xf32>
    %cst_119 = arith.constant dense<0.000000e+00> : vector<1xf32>
    %255 = vector.multi_reduction <add>, %254, %cst_119 [1, 2] : vector<1x16x64xf32> to vector<1xf32>
    %256 = vector.shape_cast %255 : vector<1xf32> to vector<1x1x1xf32>
    %257 = vector.extract %256[0, 0, 0] : f32 from vector<1x1x1xf32>
    %cst_120 = arith.constant 1.024000e+03 : f32
    %258 = arith.divf %257, %cst_120 : f32
    %259 = vector.broadcast %258 : f32 to vector<16x64xf32>
    %260 = arith.subf %253, %259 : vector<16x64xf32>
    %261 = arith.mulf %260, %260 : vector<16x64xf32>
    %262 = vector.shape_cast %261 : vector<16x64xf32> to vector<1x16x64xf32>
    %cst_121 = arith.constant dense<0.000000e+00> : vector<1xf32>
    %263 = vector.multi_reduction <add>, %262, %cst_121 [1, 2] : vector<1x16x64xf32> to vector<1xf32>
    %264 = vector.shape_cast %263 : vector<1xf32> to vector<1x1x1xf32>
    %265 = vector.extract %264[0, 0, 0] : f32 from vector<1x1x1xf32>
    %cst_122 = arith.constant 1.024000e+03 : f32
    %266 = arith.divf %265, %cst_122 : f32
    %cst_123 = arith.constant 9.99999974E-6 : f32
    %267 = arith.addf %266, %cst_123 : f32
    %268 = math.rsqrt %267 : f32
    %269 = vector.broadcast %268 : f32 to vector<16x64xf32>
    %270 = arith.mulf %260, %269 : vector<16x64xf32>
    %271 = tpu.concatenate %252, %270 in 0 : vector<16x64xf32>, vector<16x64xf32> -> vector<32x64xf32>
    %272 = vector.broadcast %146 : vector<1x64xf32> to vector<32x64xf32>
    %273 = arith.mulf %271, %272 : vector<32x64xf32>
    %274 = vector.broadcast %147 : vector<1x64xf32> to vector<32x64xf32>
    %275 = arith.addf %273, %274 : vector<32x64xf32>
    %cst_124 = arith.constant 0.000000e+00 : f32
    %276 = vector.broadcast %cst_124 : f32 to vector<32x64xf32>
    %277 = arith.maximumf %275, %276 : vector<32x64xf32>
    %c0_125 = arith.constant 0 : index
    %c0_126 = arith.constant 0 : index
    %278 = vector.load %arg21[%c0_125, %c0_126] : memref<1x128xf32, #tpu.memory_space<vmem>>, vector<1x128xf32>
    %c0_127 = arith.constant 0 : index
    %c0_128 = arith.constant 0 : index
    %279 = vector.load %arg23[%c0_127, %c0_128] : memref<1x128xf32, #tpu.memory_space<vmem>>, vector<1x128xf32>
    %c1_i32_129 = arith.constant 1 : i32
    %280 = tpu.dynamic_rotate %277 by %c1_i32_129 dim 0 : vector<32x64xf32>, i32 -> vector<32x64xf32>
    %281 = vector.broadcast %0 : vector<32x1xf32> to vector<32x64xf32>
    %282 = arith.mulf %280, %281 : vector<32x64xf32>
    %c31_i32_130 = arith.constant 31 : i32
    %283 = tpu.dynamic_rotate %277 by %c31_i32_130 dim 0 : vector<32x64xf32>, i32 -> vector<32x64xf32>
    %284 = vector.broadcast %1 : vector<32x1xf32> to vector<32x64xf32>
    %285 = arith.mulf %283, %284 : vector<32x64xf32>
    %286 = arith.truncf %282 : vector<32x64xf32> to vector<32x64xbf16>
    %c0_131 = arith.constant 0 : index
    %c0_132 = arith.constant 0 : index
    %c0_133 = arith.constant 0 : index
    %287 = vector.load %arg20[%c0_131, %c0_132, %c0_133] : memref<3x64x128xbf16, #tpu.memory_space<vmem>>, vector<1x64x128xbf16>
    %288 = vector.shape_cast %287 : vector<1x64x128xbf16> to vector<64x128xbf16>
    %cst_134 = arith.constant dense<0.000000e+00> : vector<32x128xf32>
    %289 = tpu.matmul %286, %288, %cst_134 {dimension_numbers = #tpu.dot_dimension_numbers<[1], [0], [0], [1], [0, 0, 1, 1], [], []>} : vector<32x64xbf16>, vector<64x128xbf16>, vector<32x128xf32> -> vector<32x128xf32>
    %290 = arith.truncf %277 : vector<32x64xf32> to vector<32x64xbf16>
    %c1_135 = arith.constant 1 : index
    %c0_136 = arith.constant 0 : index
    %c0_137 = arith.constant 0 : index
    %291 = vector.load %arg20[%c1_135, %c0_136, %c0_137] : memref<3x64x128xbf16, #tpu.memory_space<vmem>>, vector<1x64x128xbf16>
    %292 = vector.shape_cast %291 : vector<1x64x128xbf16> to vector<64x128xbf16>
    %cst_138 = arith.constant dense<0.000000e+00> : vector<32x128xf32>
    %293 = tpu.matmul %290, %292, %cst_138 {dimension_numbers = #tpu.dot_dimension_numbers<[1], [0], [0], [1], [0, 0, 1, 1], [], []>} : vector<32x64xbf16>, vector<64x128xbf16>, vector<32x128xf32> -> vector<32x128xf32>
    %294 = arith.addf %289, %293 : vector<32x128xf32>
    %295 = arith.truncf %285 : vector<32x64xf32> to vector<32x64xbf16>
    %c2_139 = arith.constant 2 : index
    %c0_140 = arith.constant 0 : index
    %c0_141 = arith.constant 0 : index
    %296 = vector.load %arg20[%c2_139, %c0_140, %c0_141] : memref<3x64x128xbf16, #tpu.memory_space<vmem>>, vector<1x64x128xbf16>
    %297 = vector.shape_cast %296 : vector<1x64x128xbf16> to vector<64x128xbf16>
    %cst_142 = arith.constant dense<0.000000e+00> : vector<32x128xf32>
    %298 = tpu.matmul %295, %297, %cst_142 {dimension_numbers = #tpu.dot_dimension_numbers<[1], [0], [0], [1], [0, 0, 1, 1], [], []>} : vector<32x64xbf16>, vector<64x128xbf16>, vector<32x128xf32> -> vector<32x128xf32>
    %299 = arith.addf %294, %298 : vector<32x128xf32>
    %300 = vector.broadcast %278 : vector<1x128xf32> to vector<32x128xf32>
    %301 = arith.addf %299, %300 : vector<32x128xf32>
    %302 = arith.truncf %141 : vector<32x64xf32> to vector<32x64xbf16>
    %c0_143 = arith.constant 0 : index
    %c0_144 = arith.constant 0 : index
    %303 = vector.load %arg22[%c0_143, %c0_144] : memref<64x128xbf16, #tpu.memory_space<vmem>>, vector<64x128xbf16>
    %cst_145 = arith.constant dense<0.000000e+00> : vector<32x128xf32>
    %304 = tpu.matmul %302, %303, %cst_145 {dimension_numbers = #tpu.dot_dimension_numbers<[1], [0], [0], [1], [0, 0, 1, 1], [], []>} : vector<32x64xbf16>, vector<64x128xbf16>, vector<32x128xf32> -> vector<32x128xf32>
    %305 = vector.broadcast %279 : vector<1x128xf32> to vector<32x128xf32>
    %306 = arith.addf %304, %305 : vector<32x128xf32>
    %307 = arith.addf %301, %306 : vector<32x128xf32>
    %cst_146 = arith.constant 0.000000e+00 : f32
    %308 = vector.broadcast %cst_146 : f32 to vector<32x128xf32>
    %309 = arith.maximumf %307, %308 : vector<32x128xf32>
    %c0_147 = arith.constant 0 : index
    %c0_148 = arith.constant 0 : index
    %310 = vector.load %arg24[%c0_147, %c0_148] : memref<16x32xf32, #tpu.memory_space<vmem>>, vector<16x32xf32>
    %c0_149 = arith.constant 0 : index
    %c0_150 = arith.constant 0 : index
    %311 = vector.load %arg26[%c0_149, %c0_150] : memref<1x64xf32, #tpu.memory_space<vmem>>, vector<1x64xf32>
    %c31_i32_151 = arith.constant 31 : i32
    %312 = tpu.dynamic_rotate %309 by %c31_i32_151 dim 0 : vector<32x128xf32>, i32 -> vector<32x128xf32>
    %313 = arith.truncf %309 : vector<32x128xf32> to vector<32x128xbf16>
    %c0_152 = arith.constant 0 : index
    %c0_153 = arith.constant 0 : index
    %c0_154 = arith.constant 0 : index
    %314 = vector.load %arg25[%c0_152, %c0_153, %c0_154] : memref<2x128x64xbf16, #tpu.memory_space<vmem>>, vector<1x128x64xbf16>
    %315 = vector.shape_cast %314 : vector<1x128x64xbf16> to vector<128x64xbf16>
    %cst_155 = arith.constant dense<0.000000e+00> : vector<32x64xf32>
    %316 = tpu.matmul %313, %315, %cst_155 {dimension_numbers = #tpu.dot_dimension_numbers<[1], [0], [0], [1], [0, 0, 1, 1], [], []>} : vector<32x128xbf16>, vector<128x64xbf16>, vector<32x64xf32> -> vector<32x64xf32>
    %317 = arith.truncf %312 : vector<32x128xf32> to vector<32x128xbf16>
    %c1_156 = arith.constant 1 : index
    %c0_157 = arith.constant 0 : index
    %c0_158 = arith.constant 0 : index
    %318 = vector.load %arg25[%c1_156, %c0_157, %c0_158] : memref<2x128x64xbf16, #tpu.memory_space<vmem>>, vector<1x128x64xbf16>
    %319 = vector.shape_cast %318 : vector<1x128x64xbf16> to vector<128x64xbf16>
    %cst_159 = arith.constant dense<0.000000e+00> : vector<32x64xf32>
    %320 = tpu.matmul %317, %319, %cst_159 {dimension_numbers = #tpu.dot_dimension_numbers<[1], [0], [0], [1], [0, 0, 1, 1], [], []>} : vector<32x128xbf16>, vector<128x64xbf16>, vector<32x64xf32> -> vector<32x64xf32>
    %321 = arith.addf %316, %320 : vector<32x64xf32>
    %cst_160 = arith.constant dense<0.000000e+00> : vector<16x64xf32>
    %322 = tpu.matmul %310, %321, %cst_160 {dimension_numbers = #tpu.dot_dimension_numbers<[1], [0], [0], [1], [0, 0, 1, 1], [], []>} : vector<16x32xf32>, vector<32x64xf32>, vector<16x64xf32> -> vector<16x64xf32>
    %323 = vector.broadcast %311 : vector<1x64xf32> to vector<16x64xf32>
    %324 = arith.addf %322, %323 : vector<16x64xf32>
    %c0_161 = arith.constant 0 : index
    %c0_162 = arith.constant 0 : index
    %325 = vector.load %arg27[%c0_161, %c0_162] : memref<16x64xf32, #tpu.memory_space<vmem>>, vector<16x64xf32>
    tpu.vector_store %arg27[%c0_161, %c0_162], %324 {strides = array<i32>} : memref<16x64xf32, #tpu.memory_space<vmem>>, vector<16x64xf32>,
    return
  }
  func.func @transform_0(%arg0: i32) -> (i32, i32) {
    %c0_i32 = arith.constant 0 : i32
    %c0_i32_0 = arith.constant 0 : i32
    %c0_i32_1 = arith.constant 0 : i32
    return %c0_i32, %c0_i32_0 : i32, i32
  }
  func.func @transform_1(%arg0: i32) -> (i32, i32) {
    %c0_i32 = arith.constant 0 : i32
    %c0_i32_0 = arith.constant 0 : i32
    %c0_i32_1 = arith.constant 0 : i32
    return %c0_i32, %c0_i32_0 : i32, i32
  }
  func.func @transform_2(%arg0: i32) -> (i32, i32) {
    %c0_i32 = arith.constant 0 : i32
    %c0_i32_0 = arith.constant 0 : i32
    %c0_i32_1 = arith.constant 0 : i32
    return %c0_i32, %c0_i32_0 : i32, i32
  }
  func.func @transform_3(%arg0: i32) -> (i32, i32, i32) {
    %c0_i32 = arith.constant 0 : i32
    %c0_i32_0 = arith.constant 0 : i32
    %c0_i32_1 = arith.constant 0 : i32
    %c0_i32_2 = arith.constant 0 : i32
    return %c0_i32, %c0_i32_0, %c0_i32_1 : i32, i32, i32
  }
  func.func @transform_4(%arg0: i32) -> (i32, i32) {
    %c0_i32 = arith.constant 0 : i32
    %c0_i32_0 = arith.constant 0 : i32
    %c0_i32_1 = arith.constant 0 : i32
    return %c0_i32, %c0_i32_0 : i32, i32
  }
  func.func @transform_5(%arg0: i32) -> (i32, i32) {
    %c0_i32 = arith.constant 0 : i32
    %c0_i32_0 = arith.constant 0 : i32
    %c0_i32_1 = arith.constant 0 : i32
    return %c0_i32, %c0_i32_0 : i32, i32
  }
  func.func @transform_6(%arg0: i32) -> (i32, i32) {
    %c0_i32 = arith.constant 0 : i32
    %c0_i32_0 = arith.constant 0 : i32
    %c0_i32_1 = arith.constant 0 : i32
    return %c0_i32, %c0_i32_0 : i32, i32
  }
  func.func @transform_7(%arg0: i32) -> (i32, i32, i32) {
    %c0_i32 = arith.constant 0 : i32
    %c0_i32_0 = arith.constant 0 : i32
    %c0_i32_1 = arith.constant 0 : i32
    %c0_i32_2 = arith.constant 0 : i32
    return %c0_i32, %c0_i32_0, %c0_i32_1 : i32, i32, i32
  }
  func.func @transform_8(%arg0: i32) -> (i32, i32) {
    %c0_i32 = arith.constant 0 : i32
    %c0_i32_0 = arith.constant 0 : i32
    %c0_i32_1 = arith.constant 0 : i32
    return %c0_i32, %c0_i32_0 : i32, i32
  }
  func.func @transform_9(%arg0: i32) -> (i32, i32) {
    %c0_i32 = arith.constant 0 : i32
    %c0_i32_0 = arith.constant 0 : i32
    %c0_i32_1 = arith.constant 0 : i32
    return %c0_i32, %c0_i32_0 : i32, i32
  }
  func.func @transform_10(%arg0: i32) -> (i32, i32) {
    %c0_i32 = arith.constant 0 : i32
    %c0_i32_0 = arith.constant 0 : i32
    %c0_i32_1 = arith.constant 0 : i32
    return %c0_i32, %c0_i32_0 : i32, i32
  }
  func.func @transform_11(%arg0: i32) -> (i32, i32, i32) {
    %c0_i32 = arith.constant 0 : i32
    %c0_i32_0 = arith.constant 0 : i32
    %c0_i32_1 = arith.constant 0 : i32
    %c0_i32_2 = arith.constant 0 : i32
    return %c0_i32, %c0_i32_0, %c0_i32_1 : i32, i32, i32
  }
  func.func @transform_12(%arg0: i32) -> (i32, i32) {
    %c0_i32 = arith.constant 0 : i32
    %c0_i32_0 = arith.constant 0 : i32
    %c0_i32_1 = arith.constant 0 : i32
    return %c0_i32, %c0_i32_0 : i32, i32
  }
  func.func @transform_13(%arg0: i32) -> (i32, i32) {
    %c0_i32 = arith.constant 0 : i32
    %c0_i32_0 = arith.constant 0 : i32
    %c0_i32_1 = arith.constant 0 : i32
    return %c0_i32, %c0_i32_0 : i32, i32
  }
  func.func @transform_14(%arg0: i32) -> (i32, i32) {
    %c0_i32 = arith.constant 0 : i32
    %c0_i32_0 = arith.constant 0 : i32
    %c0_i32_1 = arith.constant 0 : i32
    return %c0_i32, %c0_i32_0 : i32, i32
  }
  func.func @transform_15(%arg0: i32) -> (i32, i32, i32) {
    %c0_i32 = arith.constant 0 : i32
    %c0_i32_0 = arith.constant 0 : i32
    %c0_i32_1 = arith.constant 0 : i32
    %c0_i32_2 = arith.constant 0 : i32
    return %c0_i32, %c0_i32_0, %c0_i32_1 : i32, i32, i32
  }
  func.func @transform_16(%arg0: i32) -> (i32, i32) {
    %c0_i32 = arith.constant 0 : i32
    %c0_i32_0 = arith.constant 0 : i32
    %c0_i32_1 = arith.constant 0 : i32
    return %c0_i32, %c0_i32_0 : i32, i32
  }
  func.func @transform_17(%arg0: i32) -> (i32, i32) {
    %c0_i32 = arith.constant 0 : i32
    %c0_i32_0 = arith.constant 0 : i32
    %c0_i32_1 = arith.constant 0 : i32
    return %c0_i32, %c0_i32_0 : i32, i32
  }
  func.func @transform_18(%arg0: i32) -> (i32, i32) {
    %c0_i32 = arith.constant 0 : i32
    %c0_i32_0 = arith.constant 0 : i32
    %c0_i32_1 = arith.constant 0 : i32
    return %c0_i32, %c0_i32_0 : i32, i32
  }
  func.func @transform_19(%arg0: i32) -> (i32, i32, i32) {
    %c0_i32 = arith.constant 0 : i32
    %c0_i32_0 = arith.constant 0 : i32
    %c0_i32_1 = arith.constant 0 : i32
    %c0_i32_2 = arith.constant 0 : i32
    return %c0_i32, %c0_i32_0, %c0_i32_1 : i32, i32, i32
  }
  func.func @transform_20(%arg0: i32) -> (i32, i32) {
    %c0_i32 = arith.constant 0 : i32
    %c0_i32_0 = arith.constant 0 : i32
    %c0_i32_1 = arith.constant 0 : i32
    return %c0_i32, %c0_i32_0 : i32, i32
  }
  func.func @transform_21(%arg0: i32) -> (i32, i32) {
    %c0_i32 = arith.constant 0 : i32
    %c0_i32_0 = arith.constant 0 : i32
    %c0_i32_1 = arith.constant 0 : i32
    return %c0_i32, %c0_i32_0 : i32, i32
  }
  func.func @transform_22(%arg0: i32) -> (i32, i32) {
    %c0_i32 = arith.constant 0 : i32
    %c0_i32_0 = arith.constant 0 : i32
    %c0_i32_1 = arith.constant 0 : i32
    return %c0_i32, %c0_i32_0 : i32, i32
  }
  func.func @transform_23(%arg0: i32) -> (i32, i32) {
    %c0_i32 = arith.constant 0 : i32
    %c0_i32_0 = arith.constant 0 : i32
    %c0_i32_1 = arith.constant 0 : i32
    return %c0_i32, %c0_i32_0 : i32, i32
  }
  func.func @transform_24(%arg0: i32) -> (i32, i32, i32) {
    %c0_i32 = arith.constant 0 : i32
    %c0_i32_0 = arith.constant 0 : i32
    %c0_i32_1 = arith.constant 0 : i32
    %c0_i32_2 = arith.constant 0 : i32
    return %c0_i32, %c0_i32_0, %c0_i32_1 : i32, i32, i32
  }
  func.func @transform_25(%arg0: i32) -> (i32, i32) {
    %c0_i32 = arith.constant 0 : i32
    %c0_i32_0 = arith.constant 0 : i32
    %c0_i32_1 = arith.constant 0 : i32
    return %c0_i32, %c0_i32_0 : i32, i32
  }
  func.func @transform_26(%arg0: i32) -> (i32, i32) {
    %c0_i32 = arith.constant 0 : i32
    %c0_i32_0 = arith.constant 0 : i32
    %c0_i32_1 = arith.constant 0 : i32
    return %c0_i32, %c0_i32_0 : i32, i32
  }
}

</mosaic_0001>

<bundles_post_ra>
// kernel: forward.1
= control target key start
LH: loop header
LB: loop body
LE: loop exit
PB: predicated region body
PF: predicated region fallthrough
CT: control target
= control target key end

     0   :  { %v2714_v0 = vmov 0   ;;  %vm215_vm0 = vcmask 523264   ;;  %v106_v27 = vlaneseq  ;;  %s3676_s2 = inlined_call_operand.vmem [shape: f32[32,1], index: 2, kind: input, shape index: {}]   ;;  %s3677_s1 = inlined_call_operand.vmem [shape: f32[32,1], index: 1, kind: input, shape index: {}]   ;;  %s3678_s3 = inlined_call_operand.vmem [shape: bf16[3,64,64], index: 3, kind: input, shape index: {}]   ;;  %s3679_s0 = inlined_call_operand.vmem [shape: f32[32,64], index: 0, kind: input, shape index: {}]   ;;  %s3680_s4 = inlined_call_operand.vmem [shape: f32[1,64], index: 4, kind: input, shape index: {}]   ;;  %s3681_s5 = inlined_call_operand.vmem [shape: f32[1,64], index: 5, kind: input, shape index: {}]   ;;  %s3682_s6 = inlined_call_operand.vmem [shape: f32[1,64], index: 6, kind: input, shape index: {}]   ;;  %s3683_s7 = inlined_call_operand.vmem [shape: bf16[3,64,64], index: 7, kind: input, shape index: {}]   ;;  %s3684_s8 = inlined_call_operand.vmem [shape: f32[1,64], index: 8, kind: input, shape index: {}]   ;;  %s3685_s9 = inlined_call_operand.vmem [shape: f32[1,64], index: 9, kind: input, shape index: {}]   ;;  %s3686_s10 = inlined_call_operand.vmem [shape: f32[1,64], index: 10, kind: input, shape index: {}]   ;;  %s3687_s11 = inlined_call_operand.vmem [shape: bf16[3,64,64], index: 11, kind: input, shape index: {}]   ;;  %s3688_s12 = inlined_call_operand.vmem [shape: f32[1,64], index: 12, kind: input, shape index: {}]   ;;  %s3689_s13 = inlined_call_operand.vmem [shape: f32[1,64], index: 13, kind: input, shape index: {}]   ;;  %s3690_s14 = inlined_call_operand.vmem [shape: f32[1,64], index: 14, kind: input, shape index: {}]   ;;  %s3691_s15 = inlined_call_operand.vmem [shape: bf16[3,64,64], index: 15, kind: input, shape index: {}]   ;;  %s3692_s21 = inlined_call_operand.vmem [shape: bf16[64,128], index: 21, kind: input, shape index: {}]   ;;  %s3693_s16 = inlined_call_operand.vmem [shape: f32[1,64], index: 16, kind: input, shape index: {}]   ;;  %s3694_s22 = inlined_call_operand.vmem [shape: f32[1,128], index: 22, kind: input, shape index: {}]   ;;  %s3695_s17 = inlined_call_operand.vmem [shape: f32[1,64], index: 17, kind: input, shape index: {}]   ;;  %s3696_s18 = inlined_call_operand.vmem [shape: f32[1,64], index: 18, kind: input, shape index: {}]   ;;  %s3697_s19 = inlined_call_operand.vmem [shape: bf16[3,64,128], index: 19, kind: input, shape index: {}]   ;;  %s3698_s24 = inlined_call_operand.vmem [shape: bf16[2,128,64], index: 24, kind: input, shape index: {}]   ;;  %s3699_s20 = inlined_call_operand.vmem [shape: f32[1,128], index: 20, kind: input, shape index: {}]   ;;  %s3700_s25 = inlined_call_operand.vmem [shape: f32[1,64], index: 25, kind: input, shape index: {}]   ;;  %s3701_s23 = inlined_call_operand.vmem [shape: f32[16,32], index: 23, kind: input, shape index: {}]   ;;  %s3702_s26 = inlined_call_operand.vmem [shape: f32[16,64], index: 26, kind: output, shape index: {}]  }
   0x1   :  { %3708 = sst [smem:[#allocation2_spill]] %s3676_s2  ;;  %2679 = vset.pattern.permute.xlu1 %v2714_v0  ;;  %2678 = vset.pattern.permute.xlu0 %v2714_v0 }
   0x2   :  { %3709 = sst [smem:[#allocation3_spill]] %s3677_s1  ;;  %2680 = vset.pattern.permute.xlu2 %v2714_v0  ;;  %v2937_v28 = vshrl.u32 %v106_v27, 7 }
   0x3   :  { %3710 = sst [smem:[#allocation4_spill]] %s3678_s3 }
   0x4   :  { %3711 = sst [smem:[#allocation5_spill]] %s3679_s0  ;;  %vm108_vm1 = vcmp.lt.s32.totalorder %v2937_v28, 1  ;;  %vm141_vm2 = vcmp.lt.s32.totalorder %v2937_v28, 7  ;;  %v1871_v28 = vld [vmem:[%s3701_s23] sm:$0xff] }
   0x5   :  { %3712 = sst [smem:[#allocation6_spill]] %s3680_s4 }
   0x6   :  { %3713 = sst [smem:[#allocation7_spill]] %s3681_s5 }
   0x7   :  { %3714 = sst [smem:[#allocation8_spill]] %s3682_s6 }
   0x8   :  { %3715 = sst [smem:[#allocation9_spill]] %s3683_s7 }
   0x9   :  { %3716 = sst [smem:[#allocation10_spill]] %s3684_s8 }
   0xa   :  { %3717 = sst [smem:[#allocation11_spill]] %s3685_s9 }
   0xb   :  { %3718 = sst [smem:[#allocation12_spill]] %s3686_s10 }
   0xc   :  { %s3719_s7 = sld [smem:[#allocation2_spill]] }
   0xd   :  { %s3720_s4 = sld [smem:[#allocation3_spill]] }
   0xe   :  { %s3721_s3 = sld [smem:[#allocation4_spill]] }
   0xf   :  { %s3722_s27 = sld [smem:[#allocation5_spill]] }
  0x10   :  { %s3723_s6 = sld [smem:[#allocation6_spill]] }
  0x11   :  { %s3724_s8 = sld [smem:[#allocation9_spill]] }
  0x12   :  { %v88_v1 = vld [vmem:[%s3719_s7] sm:$0xff]  ;;  %v90_v3 = vld [vmem:[%s3719_s7 + $0x10] sm:$0xff]  ;;  %v89_v8 = vld [vmem:[%s3719_s7 + $0x8] sm:$0xff]  ;;  %s3725_s28 = sld [smem:[#allocation7_spill]] }
  0x13   :  { %v84_v2 = vld [vmem:[%s3720_s4] sm:$0xff]  ;;  %148 = vperm.xlu0 %2678, %v88_v1   ;;  %158 = vperm.xlu2 %2680, %v90_v3   ;;  %v85_v9 = vld [vmem:[%s3720_s4 + $0x8] sm:$0xff]  ;;  %v91_v10 = vld [vmem:[%s3719_s7 + $0x18] sm:$0xff] }
  0x14   :  { %115 = vperm.xlu1 %2679, %v84_v2   ;;  %v2549_v4 = vld [vmem:[%s3721_s3 + $0x38] sm:$0xff]  ;;  %v2548_v7 = vld [vmem:[%s3721_s3 + $0x30] sm:$0xff]  ;;  %v2547_v13 = vld [vmem:[%s3721_s3 + $0x28] sm:$0xff] }
  0x15   :  { %v2545_v5 = vld [vmem:[%s3721_s3 + $0x18] sm:$0xff]  ;;  %226 = vmatpush.bf16.msra.mxu0 %v2549_v4  ;;  %2622 = vmatpush.bf16.msra.mxu3 %v2549_v4  ;;  %v86_v11 = vld [vmem:[%s3720_s4 + $0x10] sm:$0xff]  ;;  %v2546_v16 = vld [vmem:[%s3721_s3 + $0x20] sm:$0xff] }
  0x16   :  { %v2553_v6 = vld [vmem:[%s3721_s3 + $0x58] sm:$0xff]  ;;  %275 = vmatpush.bf16.msra.mxu1 %v2545_v5  ;;  %v2544_v14 = vld [vmem:[%s3721_s3 + $0x10] sm:$0xff]  ;;  %v2543_v17 = vld [vmem:[%s3721_s3 + $0x8] sm:$0xff] }
  0x17   :  { %335 = vmatpush.bf16.msra.mxu2 %v2553_v6  ;;  %v87_v12 = vld [vmem:[%s3720_s4 + $0x18] sm:$0xff]  ;;  %v2552_v15 = vld [vmem:[%s3721_s3 + $0x50] sm:$0xff]  ;;  %v2551_v18 = vld [vmem:[%s3721_s3 + $0x48] sm:$0xff]  ;;  %s3726_s4 = sld [smem:[#allocation8_spill]] }
  0x18   :  { %v2908_v19 = vld [vmem:[%s3722_s27] sm:$0xff]  ;;  %v2913_v20 = vld [vmem:[%s3722_s27 + $0x8] sm:$0xff]  ;;  %v2927_v24 = vld [vmem:[%s3722_s27 + $0x18] sm:$0xff] }
  0x19   :  { %227 = vmatpush.bf16.msra.mxu0 %v2548_v7  ;;  %2623 = vmatpush.bf16.msra.mxu3 %v2548_v7  ;;  %v180_v21 = vpack.c.bf16 %v2913_v20, %v2908_v19  ;;  %v2542_v22 = vld [vmem:[%s3721_s3] sm:$0xff]  ;;  %v2932_v25 = vld [vmem:[%s3722_s27 + $0x10] sm:$0xff]  ;;  %v137_v31 = vrot.slane %v2908_v19, 1  ;;  %v138_v32 = vrot.slane %v2913_v20, 1  ;;  %v102_v33 = vrot.slane %v2908_v19, 7 }
  0x1a   :  { %276 = vmatpush.bf16.msra.mxu1 %v2544_v14  ;;  %v2550_v23 = vld [vmem:[%s3721_s3 + $0x40] sm:$0xff]  ;;  %v181_v26 = vpack.c.bf16 %v2927_v24, %v2932_v25  ;;  %v103_v34 = vrot.slane %v2913_v20, 7  ;;  %v105_v35 = vrot.slane %v2927_v24, 7  ;;  %v139_v36 = vrot.slane %v2932_v25, 1 }
  0x1b   :  { %153 = vperm.xlu0 %2678, %v89_v8   ;;  %163 = vperm.xlu2 %2680, %v91_v10   ;;  %v144_v40 = vsel %vm141_vm2, %v137_v31, %v138_v32  ;;  %v140_v50 = vrot.slane %v2927_v24, 1  ;;  %v104_v51 = vrot.slane %v2932_v25, 7  ;;  %v2681_v7 = vld [vmem:[%s3723_s6] ss:$0 sm:$0xff] }
  0x1c   :  { %120 = vperm.xlu1 %2679, %v85_v9   ;;  %336 = vmatpush.bf16.msra.mxu2 %v2552_v15  ;;  %v111_v37 = vsel %vm108_vm1, %v102_v33, %v103_v34  ;;  %v112_v38 = vsel %vm108_vm1, %v105_v35, %v102_v33  ;;  %v143_v39 = vsel %vm141_vm2, %v138_v32, %v139_v36 }
  0x1d   :  { %228 = vmatpush.bf16.msra.mxu0 %v2547_v13  ;;  %2624 = vmatpush.bf16.msra.mxu3 %v2547_v13  ;;  %v142_v53 = vsel %vm141_vm2, %v139_v36, %v140_v50  ;;  %v145_v54 = vsel %vm141_vm2, %v140_v50, %v137_v31  ;;  %v109_v57 = vsel %vm108_vm1, %v104_v51, %v105_v35 }
  0x1e   :  { %277 = vmatpush.bf16.msra.mxu1 %v2543_v17  ;;  %v110_v58 = vsel %vm108_vm1, %v103_v34, %v104_v51 }
  0x20   :  { %337 = vmatpush.bf16.msra.mxu2 %v2551_v18 }
  0x21   :  { %229 = vmatpush.bf16.msra.mxu0 %v2546_v16  ;;  %2625 = vmatpush.bf16.msra.mxu3 %v2546_v16 }
  0x22   :  { %278 = vmatpush.bf16.msra.mxu1 %v2542_v22 }
  0x23   :  { %125 = vperm.xlu0 %2678, %v86_v11  }
  0x24   :  { %130 = vperm.xlu1 %2679, %v87_v12   ;;  %2116 = vmatmul.msk.bf16.vlgmr.msra.gmra.mxu0 %vm215_vm0, %v180_v21 }
  0x25   :  { %338 = vmatpush.bf16.msra.mxu2 %v2550_v23  ;;  %2117 = vmatmul.msk.bf16.vlgmr.msra.gmra.mxu3 %vm215_vm0, %v181_v26 }
  0x6d   :  { %v2959_v41 = vpop.permute.xlu2 %158 }
  0x6e   :  { %v168_v59 = vmul.f32 %v2959_v41, %v142_v53 }
  0x75   :  { %v2973_v52 = vpop.permute.xlu2 %163 }
  0x76   :  { %v169_v60 = vmul.f32 %v2973_v52, %v145_v54 }
  0x78   :  { %v291_v63 = vpack.c.bf16 %v169_v60, %v168_v59 }
  0x85   :  { %v2939_v29 = vpop.permute.xlu0 %148 }
  0x86   :  { %v2941_v30 = vpop.permute.xlu1 %115  ;;  %v166_v46 = vmul.f32 %v2939_v29, %v144_v40 }
  0x87   :  { %v133_v44 = vmul.f32 %v2941_v30, %v112_v38 }
  0x8d   :  { %v2961_v42 = vpop.permute.xlu0 %153 }
  0x8e   :  { %v2963_v43 = vpop.permute.xlu1 %120  ;;  %v167_v47 = vmul.f32 %v2961_v42, %v143_v39  ;;  %v2715_v39 = vmov 1024.0  }
  0x8f   :  { %v134_v45 = vmul.f32 %v2963_v43, %v111_v37  ;;  %2696 = vrcp.f32 %v2715_v39 }
  0x90   :  { %v290_v49 = vpack.c.bf16 %v167_v47, %v166_v46 }
  0x91   :  { %v170_v48 = vpack.c.bf16 %v134_v45, %v133_v44 }
  0x92   :  { %2160 = vmatmul.msk.bf16.vlgmr.msra.gmra.mxu2 %vm215_vm0, %v290_v49 }
  0x93   :  { %2134 = vmatmul.msk.bf16.vlgmr.msra.gmra.mxu1 %vm215_vm0, %v170_v48 }
  0x95   :  { %v2979_v55 = vpop.permute.xlu0 %125  ;;  %v2697_v40 = vpop.eup %2696 }
  0x96   :  { %v2981_v56 = vpop.permute.xlu1 %130  ;;  %v135_v61 = vmul.f32 %v2979_v55, %v110_v58  ;;  %v374_v44 = vmul.f32 1024.0, %v2697_v40  ;;  %vm378_vm3 = vweird.f32 %v2697_v40 }
  0x97   :  { %v136_v62 = vmul.f32 %v2981_v56, %v109_v57 }
  0x98   :  { %v375_v45 = vsub.f32 1.0, %v374_v44 }
  0x99   :  { %v171_v0 = vpack.c.bf16 %v136_v62, %v135_v61 }
  0x9a   :  { %v376_v49 = vmul.f32 %v2697_v40, %v375_v45  ;;  %v3032_v45 = vld [vmem:[%s3726_s4] ss:$0 sm:$0xff] }
  0x9c   :  { %v377_v53 = vadd.f32 %v2697_v40, %v376_v49 }
  0x9e   :  { %v379_v58 = vsel %vm378_vm3, %v2697_v40, %v377_v53 }
  0xa1   :  { %v231_v2 = vpop.f32.mrf.mxu0 }
  0xa2   :  { %2161 = vmatmul.msk.bf16.gmra.mxu2 %vm215_vm0, %v291_v63 }
  0xa3   :  { %2135 = vmatmul.msk.bf16.gmra.mxu1 %vm215_vm0, %v171_v0 }
  0xa8   :  { %v236_v13 = vpop.f32.mrf.mxu3 }
  0xa9   :  { %v233_v8 = vpop.f32.mrf.mxu0 }
  0xb0   :  { %v238_v23 = vpop.f32.mrf.mxu3 }
 0x110   :  { %v280_v1 = vpop.f32.mrf.mxu1 }
 0x111   :  { %v281_v5 = vadd.f32 %v280_v1, %v231_v2 }
 0x115   :  { %v340_v3 = vpop.f32.mrf.mxu2 }
 0x116   :  { %v350_v6 = vadd.f32 %v340_v3, %v281_v5 }
 0x118   :  { %v282_v4 = vpop.f32.mrf.mxu1  ;;  %v357_v11 = vadd.f32 %v2681_v7, %v350_v6 }
 0x119   :  { %v283_v9 = vadd.f32 %v282_v4, %v233_v8 }
 0x11a   :  { %v361_v16 = vsel %vm215_vm0, %v357_v11, 0.0 }
 0x11d   :  { %v342_v10 = vpop.f32.mrf.mxu2 }
 0x11e   :  { %v351_v12 = vadd.f32 %v342_v10, %v283_v9  ;;  %v2561_v10 = vld [vmem:[%s3724_s8 + $0x38] sm:$0xff] }
 0x11f   :  { %584 = vmatpush.bf16.msrb.mxu3 %v2561_v10 }
 0x120   :  { %v285_v14 = vpop.f32.mrf.mxu1  ;;  %v358_v15 = vadd.f32 %v2681_v7, %v351_v12 }
 0x121   :  { %v286_v22 = vadd.f32 %v285_v14, %v236_v13 }
 0x122   :  { %v362_v17 = vsel %vm215_vm0, %v358_v15, 0.0 }
 0x123   :  { %v363_v18 = vadd.f32 %v362_v17, %v361_v16 }
 0x125   :  { %v345_v21 = vpop.f32.mrf.mxu2  ;;  %364 = vadd.xlane.f32.xlu2 %v363_v18 }
 0x126   :  { %v352_v27 = vadd.f32 %v345_v21, %v286_v22 }
 0x128   :  { %v287_v26 = vpop.f32.mrf.mxu1  ;;  %v2998_v33 = vadd.f32 %v2681_v7, %v352_v27 }
 0x129   :  { %v288_v31 = vadd.f32 %v287_v26, %v238_v23 }
 0x12a   :  { %v424_v36 = vsel %vm215_vm0, %v2998_v33, 0.0 }
 0x12d   :  { %v347_v32 = vpop.f32.mrf.mxu2 }
 0x12e   :  { %v353_v34 = vadd.f32 %v347_v32, %v288_v31 }
 0x130   :  { %v3000_v35 = vadd.f32 %v2681_v7, %v353_v34  ;;  %v2560_v34 = vld [vmem:[%s3724_s8 + $0x30] sm:$0xff] }
 0x131   :  { %585 = vmatpush.bf16.msrb.mxu3 %v2560_v34  ;;  %v2562_v34 = vld [vmem:[%s3724_s8 + $0x40] sm:$0xff] }
 0x132   :  { %v425_v37 = vsel %vm215_vm0, %v3000_v35, 0.0 }
 0x133   :  { %v426_v38 = vadd.f32 %v425_v37, %v424_v36  ;;  %v2559_v36 = vld [vmem:[%s3724_s8 + $0x28] sm:$0xff]  ;;  %v2558_v37 = vld [vmem:[%s3724_s8 + $0x20] sm:$0xff] }
 0x135   :  { %427 = vadd.xlane.f32.xlu1 %v426_v38  ;;  %586 = vmatpush.bf16.msrb.mxu3 %v2559_v36  ;;  %v3027_v38 = vld [vmem:[%s3725_s28] ss:$0 sm:$0xff] }
 0x139   :  { %587 = vmatpush.bf16.msrb.mxu3 %v2558_v37 }
 0x198   :  { %v365_v46 = vpop.xlane.xlu2 %364 }
 0x199   :  { %v366_v47 = vrot.slane %v365_v46, 4 }
 0x19b   :  { %v367_v48 = vadd.f32 %v366_v47, %v365_v46 }
 0x19d   :  { %v368_v50 = vrot.slane %v367_v48, 2 }
 0x19f   :  { %v369_v51 = vadd.f32 %v368_v50, %v367_v48 }
 0x1a1   :  { %v370_v54 = vrot.slane %v369_v51, 1 }
 0x1a3   :  { %v371_v57 = vadd.f32 %v370_v54, %v369_v51 }
 0x1a5   :  { %2626 = vpush %v371_v57 }
 0x1a6   :  { %2628 = vpush %v379_v58 }
 0x1d6   :  { %s2627_s0 = spop %2626 }
 0x1d7   :  { %s3006_s27 = spop %2628 }
 0x1d8   :  { %s381_s1 = smul.f32 %s3006_s27, %s2627_s0 }
 0x1da   :  { %v382_v59 = vstv %s381_s1 }
 0x1db   :  { %v383_v60 = vsub.f32 %v357_v11, %v382_v59  ;;  %v384_v61 = vsub.f32 %v358_v15, %v382_v59  ;;  %v428_v11 = vpop.xlane.xlu1 %427 }
 0x1dc   :  { %v429_v12 = vrot.slane %v428_v11, 4 }
 0x1dd   :  { %v385_v62 = vmul.f32 %v383_v60, %v383_v60  ;;  %v386_v63 = vmul.f32 %v384_v61, %v384_v61 }
 0x1de   :  { %v430_v14 = vadd.f32 %v429_v12, %v428_v11 }
 0x1df   :  { %v387_v0 = vsel %vm215_vm0, %v385_v62, 0.0  ;;  %v388_v1 = vsel %vm215_vm0, %v386_v63, 0.0 }
 0x1e0   :  { %v389_v2 = vadd.f32 %v388_v1, %v387_v0  ;;  %v431_v15 = vrot.slane %v430_v14, 2 }
 0x1e2   :  { %390 = vadd.xlane.f32.xlu0 %v389_v2  ;;  %v432_v21 = vadd.f32 %v431_v15, %v430_v14 }
 0x1e4   :  { %v433_v26 = vrot.slane %v432_v21, 1 }
 0x1e6   :  { %v434_v32 = vadd.f32 %v433_v26, %v432_v21  ;;  %v2557_v21 = vld [vmem:[%s3724_s8 + $0x18] sm:$0xff]  ;;  %v2564_v26 = vld [vmem:[%s3724_s8 + $0x50] sm:$0xff] }
 0x1e7   :  { %633 = vmatpush.bf16.msrb.mxu0 %v2557_v21 }
 0x255   :  { %v391_v3 = vpop.xlane.xlu0 %390 }
 0x256   :  { %v392_v4 = vrot.slane %v391_v3, 4 }
 0x258   :  { %v393_v5 = vadd.f32 %v392_v4, %v391_v3 }
 0x25a   :  { %v394_v6 = vrot.slane %v393_v5, 2 }
 0x25c   :  { %v395_v7 = vadd.f32 %v394_v6, %v393_v5 }
 0x25e   :  { %v396_v8 = vrot.slane %v395_v7, 1 }
 0x260   :  { %v397_v9 = vadd.f32 %v396_v8, %v395_v7 }
 0x262   :  { %2630 = vpush %v397_v9 }
 0x293   :  { %s2631_s29 = spop %2630 }
 0x294   :  { %s407_s2 = smul.f32 %s2631_s29, %s3006_s27 }
 0x296   :  { %s408_s9 = sadd.f32 1e-05, %s407_s2 }
 0x298   :  { %v409_v13 = vstv %s408_s9 }
 0x299   :  { %2698 = vrsqrt.f32 %v409_v13  ;;  %vm416_vm5 = vweird.f32 %v409_v13 }
 0x29f   :  { %v2699_v16 = vpop.eup %2698 }
 0x2a0   :  { %v411_v17 = vmul.f32 %v2699_v16, %v409_v13  ;;  %vm417_vm4 = vweird.f32 %v2699_v16 }
 0x2a1   :  { %vm418_vm6 = vmor %vm416_vm5, %vm417_vm4 }
 0x2a2   :  { %v412_v18 = vmul.f32 %v2699_v16, %v411_v17 }
 0x2a4   :  { %v413_v22 = vmul.f32 0.5, %v412_v18 }
 0x2a6   :  { %v414_v23 = vsub.f32 1.5, %v413_v22  ;;  %v2565_v22 = vld [vmem:[%s3724_s8 + $0x58] sm:$0xff] }
 0x2a7   :  { %693 = vmatpush.bf16.msrb.mxu1 %v2565_v22 }
 0x2a8   :  { %v415_v27 = vmul.f32 %v2699_v16, %v414_v23  ;;  %v2556_v23 = vld [vmem:[%s3724_s8 + $0x10] sm:$0xff] }
 0x2a9   :  { %634 = vmatpush.bf16.msrb.mxu0 %v2556_v23 }
 0x2aa   :  { %v419_v31 = vsel %vm418_vm6, %v2699_v16, %v415_v27  ;;  %v2555_v27 = vld [vmem:[%s3724_s8 + $0x8] sm:$0xff] }
 0x2ab   :  { %2632 = vpush %v419_v31  ;;  %694 = vmatpush.bf16.msrb.mxu1 %v2564_v26  ;;  %v2563_v31 = vld [vmem:[%s3724_s8 + $0x48] sm:$0xff] }
 0x2ac   :  { %2634 = vpush %v434_v32  ;;  %v2554_v32 = vld [vmem:[%s3724_s8] sm:$0xff] }
 0x2ad   :  { %635 = vmatpush.bf16.msrb.mxu0 %v2555_v27 }
 0x2af   :  { %695 = vmatpush.bf16.msrb.mxu1 %v2563_v31 }
 0x2b1   :  { %636 = vmatpush.bf16.msrb.mxu0 %v2554_v32 }
 0x2b3   :  { %696 = vmatpush.bf16.msrb.mxu1 %v2562_v34 }
 0x2dc   :  { %s2633_s0 = spop %2632 }
 0x2dd   :  { %v421_v39 = vstv %s2633_s0  ;;  %s2635_s29 = spop %2634 }
 0x2de   :  { %v422_v40 = vmul.f32 %v421_v39, %v383_v60  ;;  %v423_v44 = vmul.f32 %v421_v39, %v384_v61  ;;  %s444_s30 = smul.f32 %s2635_s29, %s3006_s27  ;;  %s3727_s29 = sld [smem:[#allocation10_spill]] }
 0x2e0   :  { %v490_v46 = vmul.f32 %v3027_v38, %v422_v40  ;;  %v491_v47 = vmul.f32 %v3027_v38, %v423_v44  ;;  %v445_v48 = vstv %s444_s30 }
 0x2e1   :  { %v446_v49 = vsub.f32 %v2998_v33, %v445_v48  ;;  %v447_v50 = vsub.f32 %v3000_v35, %v445_v48 }
 0x2e2   :  { %v497_v51 = vadd.f32 %v3032_v45, %v490_v46  ;;  %v498_v53 = vadd.f32 %v3032_v45, %v491_v47 }
 0x2e3   :  { %v448_v54 = vmul.f32 %v446_v49, %v446_v49  ;;  %v449_v57 = vmul.f32 %v447_v50, %v447_v50 }
 0x2e4   :  { %v3041_v58 = vmax.f32 %v497_v51, 0.0  ;;  %v3043_v59 = vmax.f32 %v498_v53, 0.0 }
 0x2e5   :  { %v450_v60 = vsel %vm215_vm0, %v448_v54, 0.0  ;;  %v451_v61 = vsel %vm215_vm0, %v449_v57, 0.0 }
 0x2e6   :  { %v505_v62 = vrot.slane %v3041_v58, 7  ;;  %v506_v33 = vrot.slane %v3043_v59, 7  ;;  %v517_v35 = vrot.slane %v3041_v58, 1  ;;  %v518_v63 = vrot.slane %v3043_v59, 1 }
 0x2e7   :  { %v452_v0 = vadd.f32 %v451_v61, %v450_v60  ;;  %v539_v1 = vpack.c.bf16 %v3043_v59, %v3041_v58 }
 0x2e8   :  { %v511_v2 = vsel %vm108_vm1, %v505_v62, %v506_v33  ;;  %v523_v3 = vsel %vm141_vm2, %v517_v35, %v518_v63 }
 0x2e9   :  { %453 = vadd.xlane.f32.xlu2 %v452_v0  ;;  %2186 = vmatmul.msk.bf16.vlgmr.msrb.gmra.mxu3 %vm215_vm0, %v539_v1 }
 0x35c   :  { %v454_v4 = vpop.xlane.xlu2 %453 }
 0x35d   :  { %v455_v5 = vrot.slane %v454_v4, 4 }
 0x35f   :  { %v456_v6 = vadd.f32 %v455_v5, %v454_v4 }
 0x361   :  { %v457_v7 = vrot.slane %v456_v6, 2 }
 0x363   :  { %v458_v8 = vadd.f32 %v457_v7, %v456_v6 }
 0x365   :  { %v459_v9 = vrot.slane %v458_v8, 1 }
 0x367   :  { %v460_v10 = vadd.f32 %v459_v9, %v458_v8 }
 0x369   :  { %2636 = vpush %v460_v10 }
 0x39a   :  { %s2637_s5 = spop %2636 }
 0x39b   :  { %s470_s3 = smul.f32 %s2637_s5, %s3006_s27 }
 0x39d   :  { %s471_s10 = sadd.f32 1e-05, %s470_s3 }
 0x39f   :  { %v472_v11 = vstv %s471_s10  ;;  %s3729_s10 = sld [smem:[#allocation12_spill]] }
 0x3a0   :  { %2700 = vrsqrt.f32 %v472_v11  ;;  %vm479_vm8 = vweird.f32 %v472_v11 }
 0x3a6   :  { %v2701_v12 = vpop.eup %2700 }
 0x3a7   :  { %v474_v13 = vmul.f32 %v2701_v12, %v472_v11  ;;  %vm480_vm7 = vweird.f32 %v2701_v12 }
 0x3a8   :  { %vm481_vm9 = vmor %vm479_vm8, %vm480_vm7 }
 0x3a9   :  { %v475_v14 = vmul.f32 %v2701_v12, %v474_v13 }
 0x3ab   :  { %v476_v15 = vmul.f32 0.5, %v475_v14  ;;  %v2684_v14 = vld [vmem:[%s3727_s29] ss:$0 sm:$0xff] }
 0x3ad   :  { %v477_v16 = vsub.f32 1.5, %v476_v15 }
 0x3af   :  { %v478_v17 = vmul.f32 %v2701_v12, %v477_v16 }
 0x3b1   :  { %v482_v18 = vsel %vm481_vm9, %v2701_v12, %v478_v17 }
 0x3b2   :  { %2638 = vpush %v482_v18 }
 0x3e3   :  { %s2639_s7 = spop %2638 }
 0x3e4   :  { %v484_v36 = vstv %s2639_s7 }
 0x3e5   :  { %v485_v37 = vmul.f32 %v484_v36, %v446_v49  ;;  %v486_v39 = vmul.f32 %v484_v36, %v447_v50  ;;  %v514_v50 = vmul.f32 %v511_v2, %v2963_v43 }
 0x3e7   :  { %v492_v40 = vmul.f32 %v3027_v38, %v485_v37  ;;  %v493_v44 = vmul.f32 %v3027_v38, %v486_v39 }
 0x3e9   :  { %v499_v46 = vadd.f32 %v3032_v45, %v492_v40  ;;  %v500_v47 = vadd.f32 %v3032_v45, %v493_v44  ;;  %v525_v45 = vmul.f32 %v523_v3, %v2939_v29 }
 0x3eb   :  { %v503_v48 = vmax.f32 %v499_v46, 0.0  ;;  %v504_v51 = vmax.f32 %v500_v47, 0.0 }
 0x3ed   :  { %v508_v53 = vrot.slane %v504_v51, 7  ;;  %v519_v54 = vrot.slane %v503_v48, 1  ;;  %v540_v57 = vpack.c.bf16 %v504_v51, %v503_v48  ;;  %v520_v4 = vrot.slane %v504_v51, 1 }
 0x3ef   :  { %v512_v60 = vsel %vm108_vm1, %v508_v53, %v505_v62  ;;  %v522_v49 = vsel %vm141_vm2, %v518_v63, %v519_v54  ;;  %2187 = vmatmul.msk.bf16.gmra.mxu3 %vm215_vm0, %v540_v57  ;;  %v507_v62 = vrot.slane %v503_v48, 7  ;;  %v521_v3 = vsel %vm141_vm2, %v519_v54, %v520_v4 }
 0x3f0   :  { %v513_v38 = vmul.f32 %v512_v60, %v2941_v30  ;;  %v526_v61 = vmul.f32 %v522_v49, %v2961_v42  ;;  %v524_v5 = vsel %vm141_vm2, %v520_v4, %v517_v35  ;;  %v527_v8 = vmul.f32 %v521_v3, %v2959_v41 }
 0x3f1   :  { %v509_v63 = vsel %vm108_vm1, %v507_v62, %v508_v53  ;;  %v510_v2 = vsel %vm108_vm1, %v506_v33, %v507_v62  ;;  %v528_v9 = vmul.f32 %v524_v5, %v2973_v52  ;;  %v589_v33 = vpop.f32.mrf.mxu3 }
 0x3f2   :  { %v529_v0 = vpack.c.bf16 %v514_v50, %v513_v38  ;;  %v648_v1 = vpack.c.bf16 %v526_v61, %v525_v45  ;;  %v515_v6 = vmul.f32 %v510_v2, %v2979_v55  ;;  %v516_v7 = vmul.f32 %v509_v63, %v2981_v56 }
 0x3f3   :  { %v649_v10 = vpack.c.bf16 %v528_v9, %v527_v8 }
 0x3f4   :  { %2204 = vmatmul.msk.bf16.vlgmr.msrb.gmra.mxu0 %vm215_vm0, %v529_v0  ;;  %2230 = vmatmul.msk.bf16.vlgmr.msrb.gmra.mxu1 %vm215_vm0, %v648_v1  ;;  %v530_v59 = vpack.c.bf16 %v516_v7, %v515_v6 }
 0x3f9   :  { %v591_v13 = vpop.f32.mrf.mxu3 }
 0x404   :  { %2205 = vmatmul.msk.bf16.gmra.mxu0 %vm215_vm0, %v530_v59  ;;  %2231 = vmatmul.msk.bf16.gmra.mxu1 %vm215_vm0, %v649_v10 }
 0x471   :  { %v638_v11 = vpop.f32.mrf.mxu0  ;;  %v698_v58 = vpop.f32.mrf.mxu1 }
 0x472   :  { %v639_v12 = vadd.f32 %v638_v11, %v589_v33  ;;  %v594_v23 = vpop.f32.mrf.mxu3 }
 0x474   :  { %v708_v35 = vadd.f32 %v698_v58, %v639_v12 }
 0x476   :  { %v715_v18 = vadd.f32 %v2684_v14, %v708_v35 }
 0x478   :  { %v719_v26 = vsel %vm215_vm0, %v715_v18, 0.0 }
 0x479   :  { %v640_v15 = vpop.f32.mrf.mxu0  ;;  %v700_v16 = vpop.f32.mrf.mxu1 }
 0x47a   :  { %v641_v17 = vadd.f32 %v640_v15, %v591_v13  ;;  %v596_v39 = vpop.f32.mrf.mxu3 }
 0x47c   :  { %v709_v21 = vadd.f32 %v700_v16, %v641_v17 }
 0x47e   :  { %v716_v22 = vadd.f32 %v2684_v14, %v709_v21 }
 0x480   :  { %v720_v27 = vsel %vm215_vm0, %v716_v22, 0.0 }
 0x481   :  { %v643_v31 = vpop.f32.mrf.mxu0  ;;  %v703_v32 = vpop.f32.mrf.mxu1  ;;  %v721_v34 = vadd.f32 %v720_v27, %v719_v26 }
 0x482   :  { %v644_v36 = vadd.f32 %v643_v31, %v594_v23 }
 0x483   :  { %722 = vadd.xlane.f32.xlu2 %v721_v34  ;;  %v2572_v34 = vld [vmem:[%s3687_s11 + $0x30] sm:$0xff] }
 0x484   :  { %v710_v37 = vadd.f32 %v703_v32, %v644_v36  ;;  %v2573_v32 = vld [vmem:[%s3687_s11 + $0x38] sm:$0xff]  ;;  %v2571_v36 = vld [vmem:[%s3687_s11 + $0x28] sm:$0xff] }
 0x485   :  { %956 = vmatpush.bf16.msrb.mxu2 %v2573_v32  ;;  %v2567_v32 = vld [vmem:[%s3687_s11 + $0x8] sm:$0xff] }
 0x486   :  { %v3129_v47 = vadd.f32 %v2684_v14, %v710_v37  ;;  %v2570_v37 = vld [vmem:[%s3687_s11 + $0x20] sm:$0xff] }
 0x488   :  { %v782_v53 = vsel %vm215_vm0, %v3129_v47, 0.0 }
 0x489   :  { %v645_v40 = vpop.f32.mrf.mxu0  ;;  %v705_v46 = vpop.f32.mrf.mxu1  ;;  %957 = vmatpush.bf16.msrb.mxu2 %v2572_v34  ;;  %v2575_v34 = vld [vmem:[%s3687_s11 + $0x48] sm:$0xff] }
 0x48a   :  { %v646_v44 = vadd.f32 %v645_v40, %v596_v39 }
 0x48c   :  { %v711_v48 = vadd.f32 %v705_v46, %v646_v44 }
 0x48d   :  { %958 = vmatpush.bf16.msrb.mxu2 %v2571_v36  ;;  %v2566_v36 = vld [vmem:[%s3687_s11] sm:$0xff] }
 0x48e   :  { %v3131_v51 = vadd.f32 %v2684_v14, %v711_v48  ;;  %v3161_v48 = vld [vmem:[%s3729_s10] ss:$0 sm:$0xff] }
 0x490   :  { %v783_v54 = vsel %vm215_vm0, %v3131_v51, 0.0 }
 0x491   :  { %v784_v57 = vadd.f32 %v783_v54, %v782_v53  ;;  %959 = vmatpush.bf16.msrb.mxu2 %v2570_v37  ;;  %v2574_v37 = vld [vmem:[%s3687_s11 + $0x40] sm:$0xff] }
 0x493   :  { %785 = vadd.xlane.f32.xlu1 %v784_v57 }
 0x4f6   :  { %v723_v60 = vpop.xlane.xlu2 %722 }
 0x4f7   :  { %v724_v49 = vrot.slane %v723_v60, 4 }
 0x4f9   :  { %v725_v38 = vadd.f32 %v724_v49, %v723_v60 }
 0x4fb   :  { %v726_v50 = vrot.slane %v725_v38, 2 }
 0x4fd   :  { %v727_v45 = vadd.f32 %v726_v50, %v725_v38 }
 0x4ff   :  { %v728_v61 = vrot.slane %v727_v45, 1 }
 0x501   :  { %v729_v0 = vadd.f32 %v728_v61, %v727_v45 }
 0x503   :  { %2640 = vpush %v729_v0 }
 0x506   :  { %v786_v58 = vpop.xlane.xlu1 %785 }
 0x507   :  { %v787_v12 = vrot.slane %v786_v58, 4 }
 0x509   :  { %v788_v35 = vadd.f32 %v787_v12, %v786_v58 }
 0x50b   :  { %v789_v14 = vrot.slane %v788_v35, 2 }
 0x534   :  { %s2641_s2 = spop %2640 }
 0x535   :  { %s739_s9 = smul.f32 %s2641_s2, %s3006_s27 }
 0x537   :  { %v740_v1 = vstv %s739_s9 }
 0x538   :  { %v741_v62 = vsub.f32 %v715_v18, %v740_v1  ;;  %v742_v4 = vsub.f32 %v716_v22, %v740_v1  ;;  %v790_v18 = vadd.f32 %v789_v14, %v788_v35 }
 0x53a   :  { %v743_v63 = vmul.f32 %v741_v62, %v741_v62  ;;  %v744_v2 = vmul.f32 %v742_v4, %v742_v4  ;;  %v791_v23 = vrot.slane %v790_v18, 1 }
 0x53c   :  { %v745_v3 = vsel %vm215_vm0, %v743_v63, 0.0  ;;  %v746_v5 = vsel %vm215_vm0, %v744_v2, 0.0  ;;  %v792_v31 = vadd.f32 %v791_v23, %v790_v18  ;;  %v2569_v23 = vld [vmem:[%s3687_s11 + $0x18] sm:$0xff] }
 0x53d   :  { %v747_v6 = vadd.f32 %v746_v5, %v745_v3  ;;  %1005 = vmatpush.bf16.msra.mxu3 %v2569_v23 }
 0x53f   :  { %748 = vadd.xlane.f32.xlu0 %v747_v6 }
 0x5b2   :  { %v749_v7 = vpop.xlane.xlu0 %748 }
 0x5b3   :  { %v750_v8 = vrot.slane %v749_v7, 4 }
 0x5b5   :  { %v751_v9 = vadd.f32 %v750_v8, %v749_v7 }
 0x5b7   :  { %v752_v59 = vrot.slane %v751_v9, 2 }
 0x5b9   :  { %v753_v10 = vadd.f32 %v752_v59, %v751_v9 }
 0x5bb   :  { %v754_v33 = vrot.slane %v753_v10, 1 }
 0x5bd   :  { %v755_v11 = vadd.f32 %v754_v33, %v753_v10 }
 0x5bf   :  { %2642 = vpush %v755_v11 }
 0x5f0   :  { %s2643_s4 = spop %2642 }
 0x5f1   :  { %s765_s30 = smul.f32 %s2643_s4, %s3006_s27  ;;  %s3728_s4 = sld [smem:[#allocation11_spill]] }
 0x5f3   :  { %s766_s5 = sadd.f32 1e-05, %s765_s30 }
 0x5f5   :  { %v767_v13 = vstv %s766_s5 }
 0x5f6   :  { %2702 = vrsqrt.f32 %v767_v13  ;;  %vm774_vm11 = vweird.f32 %v767_v13 }
 0x5f7   :  { %v3156_v39 = vld [vmem:[%s3728_s4] ss:$0 sm:$0xff] }
 0x5fc   :  { %v2703_v15 = vpop.eup %2702 }
 0x5fd   :  { %v769_v16 = vmul.f32 %v2703_v15, %v767_v13  ;;  %vm775_vm10 = vweird.f32 %v2703_v15 }
 0x5fe   :  { %vm776_vm12 = vmor %vm774_vm11, %vm775_vm10 }
 0x5ff   :  { %v770_v17 = vmul.f32 %v2703_v15, %v769_v16 }
 0x601   :  { %v771_v21 = vmul.f32 0.5, %v770_v17 }
 0x603   :  { %v772_v22 = vsub.f32 1.5, %v771_v21 }
 0x605   :  { %v773_v26 = vmul.f32 %v2703_v15, %v772_v22 }
 0x607   :  { %v777_v27 = vsel %vm776_vm12, %v2703_v15, %v773_v26  ;;  %v2577_v26 = vld [vmem:[%s3687_s11 + $0x58] sm:$0xff] }
 0x608   :  { %2644 = vpush %v777_v27  ;;  %1065 = vmatpush.bf16.msra.mxu0 %v2577_v26  ;;  %v2568_v27 = vld [vmem:[%s3687_s11 + $0x10] sm:$0xff] }
 0x609   :  { %2646 = vpush %v792_v31  ;;  %v2576_v31 = vld [vmem:[%s3687_s11 + $0x50] sm:$0xff]  ;;  %1006 = vmatpush.bf16.msra.mxu3 %v2568_v27 }
 0x60c   :  { %1066 = vmatpush.bf16.msra.mxu0 %v2576_v31 }
 0x60d   :  { %1007 = vmatpush.bf16.msra.mxu3 %v2567_v32 }
 0x610   :  { %1067 = vmatpush.bf16.msra.mxu0 %v2575_v34 }
 0x611   :  { %1008 = vmatpush.bf16.msra.mxu3 %v2566_v36 }
 0x614   :  { %1068 = vmatpush.bf16.msra.mxu0 %v2574_v37 }
 0x639   :  { %s2645_s29 = spop %2644 }
 0x63a   :  { %v779_v40 = vstv %s2645_s29  ;;  %s2647_s30 = spop %2646 }
 0x63b   :  { %v780_v44 = vmul.f32 %v779_v40, %v741_v62  ;;  %v781_v46 = vmul.f32 %v779_v40, %v742_v4  ;;  %s802_s6 = smul.f32 %s2647_s30, %s3006_s27 }
 0x63d   :  { %v848_v53 = vmul.f32 %v3156_v39, %v780_v44  ;;  %v849_v54 = vmul.f32 %v3156_v39, %v781_v46  ;;  %v803_v57 = vstv %s802_s6 }
 0x63e   :  { %v3167_v60 = vsub.f32 %v3129_v47, %v803_v57  ;;  %v3170_v49 = vsub.f32 %v3131_v51, %v803_v57 }
 0x63f   :  { %v855_v38 = vadd.f32 %v3161_v48, %v848_v53  ;;  %v856_v50 = vadd.f32 %v3161_v48, %v849_v54 }
 0x640   :  { %v806_v45 = vmul.f32 %v3167_v60, %v3167_v60  ;;  %v807_v61 = vmul.f32 %v3170_v49, %v3170_v49 }
 0x641   :  { %v859_v0 = vmax.f32 %v855_v38, 0.0  ;;  %v860_v1 = vmax.f32 %v856_v50, 0.0 }
 0x642   :  { %v808_v62 = vsel %vm215_vm0, %v806_v45, 0.0  ;;  %v809_v47 = vsel %vm215_vm0, %v807_v61, 0.0 }
 0x643   :  { %v863_v4 = vadd.f32 %v859_v0, %v2908_v19  ;;  %v864_v51 = vadd.f32 %v860_v1, %v2913_v20  ;;  %v810_v63 = vadd.f32 %v809_v47, %v808_v62 }
 0x645   :  { %v3182_v2 = vmax.f32 %v863_v4, 0.0  ;;  %v3184_v3 = vmax.f32 %v864_v51, 0.0  ;;  %811 = vadd.xlane.f32.xlu2 %v810_v63 }
 0x647   :  { %v877_v5 = vrot.slane %v3182_v2, 7  ;;  %v878_v6 = vrot.slane %v3184_v3, 7  ;;  %v889_v7 = vrot.slane %v3182_v2, 1  ;;  %v890_v8 = vrot.slane %v3184_v3, 1 }
 0x648   :  { %v3192_v19 = vpack.c.bf16 %v3184_v3, %v3182_v2 }
 0x649   :  { %v3200_v20 = vsel %vm108_vm1, %v877_v5, %v878_v6  ;;  %v3208_v9 = vsel %vm141_vm2, %v889_v7, %v890_v8 }
 0x64a   :  { %2256 = vmatmul.msk.bf16.vlgmr.msrb.gmra.mxu2 %vm215_vm0, %v3192_v19 }
 0x6b8   :  { %v812_v59 = vpop.xlane.xlu2 %811 }
 0x6b9   :  { %v813_v10 = vrot.slane %v812_v59, 4 }
 0x6bb   :  { %v814_v33 = vadd.f32 %v813_v10, %v812_v59 }
 0x6bd   :  { %v815_v11 = vrot.slane %v814_v33, 2 }
 0x6bf   :  { %v816_v58 = vadd.f32 %v815_v11, %v814_v33 }
 0x6c1   :  { %v817_v12 = vrot.slane %v816_v58, 1 }
 0x6c3   :  { %v818_v13 = vadd.f32 %v817_v12, %v816_v58 }
 0x6c5   :  { %2648 = vpush %v818_v13 }
 0x6f6   :  { %s2649_s0 = spop %2648 }
 0x6f7   :  { %s828_s1 = smul.f32 %s2649_s0, %s3006_s27 }
 0x6f9   :  { %s829_s7 = sadd.f32 1e-05, %s828_s1 }
 0x6fb   :  { %v830_v35 = vstv %s829_s7 }
 0x6fc   :  { %2704 = vrsqrt.f32 %v830_v35  ;;  %vm837_vm14 = vweird.f32 %v830_v35 }
 0x702   :  { %v2705_v14 = vpop.eup %2704 }
 0x703   :  { %v832_v15 = vmul.f32 %v2705_v14, %v830_v35  ;;  %vm838_vm13 = vweird.f32 %v2705_v14 }
 0x704   :  { %vm839_vm15 = vmor %vm837_vm14, %vm838_vm13 }
 0x705   :  { %v833_v16 = vmul.f32 %v2705_v14, %v832_v15 }
 0x707   :  { %v834_v17 = vmul.f32 0.5, %v833_v16 }
 0x709   :  { %v835_v18 = vsub.f32 1.5, %v834_v17 }
 0x70b   :  { %v836_v21 = vmul.f32 %v2705_v14, %v835_v18  ;;  %v2687_v18 = vld [vmem:[%s3688_s12] ss:$0 sm:$0xff] }
 0x70d   :  { %v840_v22 = vsel %vm839_vm15, %v2705_v14, %v836_v21 }
 0x70e   :  { %2650 = vpush %v840_v22 }
 0x73f   :  { %s2651_s29 = spop %2650 }
 0x740   :  { %v842_v40 = vstv %s2651_s29 }
 0x741   :  { %v843_v44 = vmul.f32 %v842_v40, %v3167_v60  ;;  %v844_v46 = vmul.f32 %v842_v40, %v3170_v49  ;;  %v897_v49 = vmul.f32 %v3208_v9, %v2939_v29 }
 0x743   :  { %v850_v53 = vmul.f32 %v3156_v39, %v843_v44  ;;  %v851_v54 = vmul.f32 %v3156_v39, %v844_v46 }
 0x745   :  { %v857_v57 = vadd.f32 %v3161_v48, %v850_v53  ;;  %v858_v38 = vadd.f32 %v3161_v48, %v851_v54  ;;  %v886_v48 = vmul.f32 %v3200_v20, %v2963_v43 }
 0x747   :  { %v861_v50 = vmax.f32 %v857_v57, 0.0  ;;  %v862_v45 = vmax.f32 %v858_v38, 0.0 }
 0x749   :  { %v865_v61 = vadd.f32 %v861_v50, %v2932_v25  ;;  %v866_v0 = vadd.f32 %v862_v45, %v2927_v24 }
 0x74b   :  { %v869_v1 = vmax.f32 %v865_v61, 0.0  ;;  %v870_v62 = vmax.f32 %v866_v0, 0.0 }
 0x74d   :  { %v880_v47 = vrot.slane %v870_v62, 7  ;;  %v891_v60 = vrot.slane %v869_v1, 1  ;;  %v3245_v4 = vpack.c.bf16 %v870_v62, %v869_v1  ;;  %v892_v10 = vrot.slane %v870_v62, 1 }
 0x74f   :  { %2257 = vmatmul.msk.bf16.gmra.mxu2 %vm215_vm0, %v3245_v4  ;;  %v884_v39 = vsel %vm108_vm1, %v880_v47, %v877_v5  ;;  %v894_v25 = vsel %vm141_vm2, %v890_v8, %v891_v60  ;;  %v879_v5 = vrot.slane %v869_v1, 7  ;;  %v893_v9 = vsel %vm141_vm2, %v891_v60, %v892_v10 }
 0x750   :  { %v885_v24 = vmul.f32 %v884_v39, %v2941_v30  ;;  %v898_v51 = vmul.f32 %v894_v25, %v2961_v42  ;;  %v896_v33 = vsel %vm141_vm2, %v892_v10, %v889_v7  ;;  %v899_v12 = vmul.f32 %v893_v9, %v2959_v41 }
 0x751   :  { %v881_v8 = vsel %vm108_vm1, %v879_v5, %v880_v47  ;;  %v882_v20 = vsel %vm108_vm1, %v878_v6, %v879_v5  ;;  %v900_v13 = vmul.f32 %v896_v33, %v2973_v52  ;;  %v961_v6 = vpop.f32.mrf.mxu2 }
 0x752   :  { %v901_v63 = vpack.c.bf16 %v886_v48, %v885_v24  ;;  %v1020_v59 = vpack.c.bf16 %v898_v51, %v897_v49  ;;  %v887_v11 = vmul.f32 %v882_v20, %v2979_v55  ;;  %v888_v58 = vmul.f32 %v881_v8, %v2981_v56 }
 0x753   :  { %v1021_v35 = vpack.c.bf16 %v900_v13, %v899_v12 }
 0x754   :  { %2274 = vmatmul.msk.bf16.vlgmr.msra.gmra.mxu3 %vm215_vm0, %v901_v63  ;;  %2300 = vmatmul.msk.bf16.vlgmr.msra.gmra.mxu0 %vm215_vm0, %v1020_v59  ;;  %v902_v3 = vpack.c.bf16 %v888_v58, %v887_v11 }
 0x759   :  { %v963_v16 = vpop.f32.mrf.mxu2 }
 0x764   :  { %2275 = vmatmul.msk.bf16.gmra.mxu3 %vm215_vm0, %v902_v3  ;;  %2301 = vmatmul.msk.bf16.gmra.mxu0 %vm215_vm0, %v1021_v35 }
 0x7d1   :  { %v1070_v14 = vpop.f32.mrf.mxu0 }
 0x7d2   :  { %v966_v31 = vpop.f32.mrf.mxu2 }
 0x7d7   :  { %v1010_v2 = vpop.f32.mrf.mxu3 }
 0x7d8   :  { %v1011_v15 = vadd.f32 %v1010_v2, %v961_v6  ;;  %v2585_v6 = vld [vmem:[%s3691_s15 + $0x38] sm:$0xff] }
 0x7d9   :  { %v1072_v7 = vpop.f32.mrf.mxu0  ;;  %1314 = vmatpush.bf16.msra.mxu1 %v2585_v6 }
 0x7da   :  { %v1080_v17 = vadd.f32 %v1070_v14, %v1011_v15  ;;  %v968_v53 = vpop.f32.mrf.mxu2 }
 0x7dc   :  { %v1087_v26 = vadd.f32 %v2687_v18, %v1080_v17 }
 0x7de   :  { %v1091_v32 = vsel %vm215_vm0, %v1087_v26, 0.0 }
 0x7df   :  { %v1012_v21 = vpop.f32.mrf.mxu3 }
 0x7e0   :  { %v1013_v22 = vadd.f32 %v1012_v21, %v963_v16 }
 0x7e1   :  { %v1075_v36 = vpop.f32.mrf.mxu0 }
 0x7e2   :  { %v1081_v23 = vadd.f32 %v1072_v7, %v1013_v22 }
 0x7e4   :  { %v1088_v27 = vadd.f32 %v2687_v18, %v1081_v23 }
 0x7e6   :  { %v1092_v34 = vsel %vm215_vm0, %v1088_v27, 0.0 }
 0x7e7   :  { %v1015_v37 = vpop.f32.mrf.mxu3  ;;  %v1093_v40 = vadd.f32 %v1092_v34, %v1091_v32 }
 0x7e8   :  { %v1016_v44 = vadd.f32 %v1015_v37, %v966_v31  ;;  %v2583_v37 = vld [vmem:[%s3691_s15 + $0x28] sm:$0xff] }
 0x7e9   :  { %1094 = vadd.xlane.f32.xlu0 %v1093_v40  ;;  %v1077_v38 = vpop.f32.mrf.mxu0  ;;  %v2582_v40 = vld [vmem:[%s3691_s15 + $0x20] sm:$0xff] }
 0x7ea   :  { %v1082_v46 = vadd.f32 %v1075_v36, %v1016_v44  ;;  %v2584_v36 = vld [vmem:[%s3691_s15 + $0x30] sm:$0xff]  ;;  %v3315_v44 = vld [vmem:[%s3689_s13] ss:$0 sm:$0xff] }
 0x7eb   :  { %1315 = vmatpush.bf16.msra.mxu1 %v2584_v36  ;;  %v2605_v36 = vld [vmem:[%s3692_s21 + $0x18] sm:$0xff] }
 0x7ec   :  { %v3288_v45 = vadd.f32 %v2687_v18, %v1082_v46 }
 0x7ee   :  { %v1154_v0 = vsel %vm215_vm0, %v3288_v45, 0.0 }
 0x7ef   :  { %v1017_v54 = vpop.f32.mrf.mxu3  ;;  %1316 = vmatpush.bf16.msra.mxu1 %v2583_v37 }
 0x7f0   :  { %v1018_v57 = vadd.f32 %v1017_v54, %v968_v53 }
 0x7f2   :  { %v1083_v50 = vadd.f32 %v1077_v38, %v1018_v57  ;;  %v3320_v57 = vld [vmem:[%s3690_s14] ss:$0 sm:$0xff] }
 0x7f3   :  { %1317 = vmatpush.bf16.msra.mxu1 %v2582_v40 }
 0x7f4   :  { %v3290_v61 = vadd.f32 %v2687_v18, %v1083_v50 }
 0x7f6   :  { %v1155_v1 = vsel %vm215_vm0, %v3290_v61, 0.0 }
 0x7f7   :  { %v1156_v62 = vadd.f32 %v1155_v1, %v1154_v0 }
 0x7f9   :  { %1157 = vadd.xlane.f32.xlu2 %v1156_v62 }
 0x85c   :  { %v1095_v47 = vpop.xlane.xlu0 %1094 }
 0x85d   :  { %v1096_v60 = vrot.slane %v1095_v47, 4 }
 0x85f   :  { %v1097_v39 = vadd.f32 %v1096_v60, %v1095_v47 }
 0x861   :  { %v1098_v25 = vrot.slane %v1097_v39, 2 }
 0x863   :  { %v1099_v24 = vadd.f32 %v1098_v25, %v1097_v39 }
 0x865   :  { %v1100_v48 = vrot.slane %v1099_v24, 1 }
 0x867   :  { %v1101_v49 = vadd.f32 %v1100_v48, %v1099_v24 }
 0x869   :  { %2652 = vpush %v1101_v49 }
 0x86c   :  { %v1158_v14 = vpop.xlane.xlu2 %1157 }
 0x86d   :  { %v1159_v2 = vrot.slane %v1158_v14, 4 }
 0x86f   :  { %v1160_v16 = vadd.f32 %v1159_v2, %v1158_v14 }
 0x871   :  { %v1161_v7 = vrot.slane %v1160_v16, 2 }
 0x873   :  { %v1162_v22 = vadd.f32 %v1161_v7, %v1160_v16 }
 0x89a   :  { %s2653_s12 = spop %2652 }
 0x89b   :  { %s1111_s9 = smul.f32 %s2653_s12, %s3006_s27 }
 0x89d   :  { %v1112_v51 = vstv %s1111_s9 }
 0x89e   :  { %v1113_v63 = vsub.f32 %v1087_v26, %v1112_v51  ;;  %v1114_v59 = vsub.f32 %v1088_v27, %v1112_v51  ;;  %v1163_v27 = vrot.slane %v1162_v22, 1 }
 0x8a0   :  { %v1115_v5 = vmul.f32 %v1113_v63, %v1113_v63  ;;  %v1116_v10 = vmul.f32 %v1114_v59, %v1114_v59  ;;  %v1164_v34 = vadd.f32 %v1163_v27, %v1162_v22  ;;  %v2580_v22 = vld [vmem:[%s3691_s15 + $0x10] sm:$0xff]  ;;  %v2587_v27 = vld [vmem:[%s3691_s15 + $0x48] sm:$0xff] }
 0x8a2   :  { %v1117_v8 = vsel %vm215_vm0, %v1115_v5, 0.0  ;;  %v1118_v20 = vsel %vm215_vm0, %v1116_v10, 0.0 }
 0x8a3   :  { %v1119_v9 = vadd.f32 %v1118_v20, %v1117_v8 }
 0x8a5   :  { %1120 = vadd.xlane.f32.xlu1 %v1119_v9 }
 0x918   :  { %v1121_v33 = vpop.xlane.xlu1 %1120 }
 0x919   :  { %v1122_v11 = vrot.slane %v1121_v33, 4 }
 0x91b   :  { %v1123_v58 = vadd.f32 %v1122_v11, %v1121_v33 }
 0x91d   :  { %v1124_v12 = vrot.slane %v1123_v58, 2 }
 0x91f   :  { %v1125_v13 = vadd.f32 %v1124_v12, %v1123_v58 }
 0x921   :  { %v1126_v3 = vrot.slane %v1125_v13, 1 }
 0x923   :  { %v1127_v35 = vadd.f32 %v1126_v3, %v1125_v13 }
 0x925   :  { %2654 = vpush %v1127_v35 }
 0x956   :  { %s2655_s5 = spop %2654 }
 0x957   :  { %s1137_s3 = smul.f32 %s2655_s5, %s3006_s27 }
 0x959   :  { %s1138_s10 = sadd.f32 1e-05, %s1137_s3 }
 0x95b   :  { %v1139_v15 = vstv %s1138_s10 }
 0x95c   :  { %2706 = vrsqrt.f32 %v1139_v15  ;;  %vm1146_vm4 = vweird.f32 %v1139_v15 }
 0x962   :  { %v2707_v17 = vpop.eup %2706 }
 0x963   :  { %v1141_v18 = vmul.f32 %v2707_v17, %v1139_v15  ;;  %vm1147_vm3 = vweird.f32 %v2707_v17 }
 0x964   :  { %vm1148_vm5 = vmor %vm1146_vm4, %vm1147_vm3 }
 0x965   :  { %v1142_v21 = vmul.f32 %v2707_v17, %v1141_v18  ;;  %v2581_v18 = vld [vmem:[%s3691_s15 + $0x18] sm:$0xff] }
 0x966   :  { %1363 = vmatpush.bf16.msra.mxu2 %v2581_v18 }
 0x967   :  { %v1143_v23 = vmul.f32 0.5, %v1142_v21  ;;  %v2589_v21 = vld [vmem:[%s3691_s15 + $0x58] sm:$0xff] }
 0x968   :  { %1423 = vmatpush.bf16.msrb.mxu3 %v2589_v21 }
 0x969   :  { %v1144_v26 = vsub.f32 1.5, %v1143_v23  ;;  %v2588_v23 = vld [vmem:[%s3691_s15 + $0x50] sm:$0xff] }
 0x96a   :  { %1364 = vmatpush.bf16.msra.mxu2 %v2580_v22 }
 0x96b   :  { %v1145_v31 = vmul.f32 %v2707_v17, %v1144_v26  ;;  %v2579_v26 = vld [vmem:[%s3691_s15 + $0x8] sm:$0xff] }
 0x96c   :  { %1424 = vmatpush.bf16.msrb.mxu3 %v2588_v23 }
 0x96d   :  { %v1149_v32 = vsel %vm1148_vm5, %v2707_v17, %v1145_v31  ;;  %v2578_v31 = vld [vmem:[%s3691_s15] sm:$0xff] }
 0x96e   :  { %2656 = vpush %v1149_v32  ;;  %1365 = vmatpush.bf16.msra.mxu2 %v2579_v26  ;;  %v2586_v32 = vld [vmem:[%s3691_s15 + $0x40] sm:$0xff] }
 0x96f   :  { %2658 = vpush %v1164_v34 }
 0x970   :  { %1425 = vmatpush.bf16.msrb.mxu3 %v2587_v27 }
 0x972   :  { %1366 = vmatpush.bf16.msra.mxu2 %v2578_v31 }
 0x974   :  { %1426 = vmatpush.bf16.msrb.mxu3 %v2586_v32 }
 0x978   :  { %1848 = vmatpush.bf16.msra.mxu3 %v2605_v36 }
 0x99f   :  { %s2657_s29 = spop %2656 }
 0x9a0   :  { %v1151_v46 = vstv %s2657_s29  ;;  %s2659_s12 = spop %2658 }
 0x9a1   :  { %v1152_v53 = vmul.f32 %v1151_v46, %v1113_v63  ;;  %v1153_v54 = vmul.f32 %v1151_v46, %v1114_v59  ;;  %s1174_s30 = smul.f32 %s2659_s12, %s3006_s27  ;;  %v2604_v46 = vld [vmem:[%s3692_s21 + $0x10] sm:$0xff] }
 0x9a2   :  { %1849 = vmatpush.bf16.msra.mxu3 %v2604_v46 }
 0x9a3   :  { %v1220_v38 = vmul.f32 %v3315_v44, %v1152_v53  ;;  %v1221_v50 = vmul.f32 %v3315_v44, %v1153_v54  ;;  %v1175_v0 = vstv %s1174_s30 }
 0x9a4   :  { %v3326_v1 = vsub.f32 %v3288_v45, %v1175_v0  ;;  %v3329_v62 = vsub.f32 %v3290_v61, %v1175_v0  ;;  %v2603_v0 = vld [vmem:[%s3692_s21 + $0x8] sm:$0xff] }
 0x9a5   :  { %v1227_v47 = vadd.f32 %v3320_v57, %v1220_v38  ;;  %v1228_v60 = vadd.f32 %v3320_v57, %v1221_v50 }
 0x9a6   :  { %v1178_v39 = vmul.f32 %v3326_v1, %v3326_v1  ;;  %v1179_v25 = vmul.f32 %v3329_v62, %v3329_v62  ;;  %1850 = vmatpush.bf16.msra.mxu3 %v2603_v0 }
 0x9a7   :  { %v3337_v24 = vmax.f32 %v1227_v47, 0.0  ;;  %v3339_v48 = vmax.f32 %v1228_v60, 0.0 }
 0x9a8   :  { %v1180_v45 = vsel %vm215_vm0, %v1178_v39, 0.0  ;;  %v1181_v49 = vsel %vm215_vm0, %v1179_v25, 0.0  ;;  %v2602_v25 = vld [vmem:[%s3692_s21] sm:$0xff] }
 0x9a9   :  { %v1235_v61 = vrot.slane %v3337_v24, 7  ;;  %v1236_v51 = vrot.slane %v3339_v48, 7  ;;  %v1247_v63 = vrot.slane %v3337_v24, 1  ;;  %v1248_v59 = vrot.slane %v3339_v48, 1 }
 0x9aa   :  { %v1269_v5 = vpack.c.bf16 %v3339_v48, %v3337_v24  ;;  %v1182_v10 = vadd.f32 %v1181_v49, %v1180_v45  ;;  %1851 = vmatpush.bf16.msra.mxu3 %v2602_v25 }
 0x9ab   :  { %v3355_v8 = vsel %vm108_vm1, %v1235_v61, %v1236_v51  ;;  %v3363_v20 = vsel %vm141_vm2, %v1247_v63, %v1248_v59 }
 0x9ac   :  { %1183 = vadd.xlane.f32.xlu0 %v1182_v10  ;;  %2326 = vmatmul.msk.bf16.vlgmr.msra.gmra.mxu1 %vm215_vm0, %v1269_v5  ;;  %v1244_v49 = vmul.f32 %v3355_v8, %v2963_v43  ;;  %v1255_v5 = vmul.f32 %v3363_v20, %v2939_v29 }
 0xa1f   :  { %v1184_v9 = vpop.xlane.xlu0 %1183 }
 0xa20   :  { %v1185_v33 = vrot.slane %v1184_v9, 4 }
 0xa22   :  { %v1186_v11 = vadd.f32 %v1185_v33, %v1184_v9 }
 0xa24   :  { %v1187_v58 = vrot.slane %v1186_v11, 2 }
 0xa26   :  { %v1188_v12 = vadd.f32 %v1187_v58, %v1186_v11 }
 0xa28   :  { %v1189_v13 = vrot.slane %v1188_v12, 1 }
 0xa29   :  { %v1319_v24 = vpop.f32.mrf.mxu1 }
 0xa2a   :  { %v1190_v3 = vadd.f32 %v1189_v13, %v1188_v12 }
 0xa2c   :  { %2660 = vpush %v1190_v3 }
 0xa5d   :  { %s2661_s13 = spop %2660 }
 0xa5e   :  { %s1200_s14 = smul.f32 %s2661_s13, %s3006_s27 }
 0xa60   :  { %s1201_s5 = sadd.f32 1e-05, %s1200_s14 }
 0xa62   :  { %v1202_v35 = vstv %s1201_s5 }
 0xa63   :  { %2708 = vrsqrt.f32 %v1202_v35  ;;  %vm1209_vm7 = vweird.f32 %v1202_v35 }
 0xa69   :  { %v2709_v6 = vpop.eup %2708 }
 0xa6a   :  { %v1204_v14 = vmul.f32 %v2709_v6, %v1202_v35  ;;  %vm1210_vm6 = vweird.f32 %v2709_v6 }
 0xa6b   :  { %vm1211_vm8 = vmor %vm1209_vm7, %vm1210_vm6 }
 0xa6c   :  { %v1205_v2 = vmul.f32 %v2709_v6, %v1204_v14 }
 0xa6e   :  { %v1206_v15 = vmul.f32 0.5, %v1205_v2  ;;  %v1321_v2 = vpop.f32.mrf.mxu1 }
 0xa70   :  { %v1207_v16 = vsub.f32 1.5, %v1206_v15 }
 0xa72   :  { %v1208_v7 = vmul.f32 %v2709_v6, %v1207_v16  ;;  %v2690_v16 = vld [vmem:[%s3693_s16] ss:$0 sm:$0xff] }
 0xa74   :  { %v1212_v17 = vsel %vm1211_vm8, %v2709_v6, %v1208_v7 }
 0xa75   :  { %2662 = vpush %v1212_v17 }
 0xaa6   :  { %s2663_s14 = spop %2662 }
 0xaa7   :  { %v1214_v34 = vstv %s2663_s14 }
 0xaa8   :  { %v1215_v37 = vmul.f32 %v1214_v34, %v3326_v1  ;;  %v1216_v40 = vmul.f32 %v1214_v34, %v3329_v62 }
 0xaaa   :  { %v1222_v53 = vmul.f32 %v3315_v44, %v1215_v37  ;;  %v1223_v54 = vmul.f32 %v3315_v44, %v1216_v40 }
 0xaac   :  { %v1229_v38 = vadd.f32 %v3320_v57, %v1222_v53  ;;  %v1230_v50 = vadd.f32 %v3320_v57, %v1223_v54 }
 0xaae   :  { %v1233_v1 = vmax.f32 %v1229_v38, 0.0  ;;  %v1234_v62 = vmax.f32 %v1230_v50, 0.0 }
 0xab0   :  { %v1238_v47 = vrot.slane %v1234_v62, 7  ;;  %v1249_v60 = vrot.slane %v1233_v1, 1  ;;  %v1270_v39 = vpack.c.bf16 %v1234_v62, %v1233_v1 }
 0xab2   :  { %v1242_v44 = vsel %vm108_vm1, %v1238_v47, %v1235_v61  ;;  %v1252_v57 = vsel %vm141_vm2, %v1248_v59, %v1249_v60  ;;  %2327 = vmatmul.msk.bf16.gmra.mxu1 %vm215_vm0, %v1270_v39  ;;  %v1237_v61 = vrot.slane %v1233_v1, 7  ;;  %v1250_v59 = vrot.slane %v1234_v62, 1 }
 0xab3   :  { %v1243_v45 = vmul.f32 %v1242_v44, %v2941_v30  ;;  %v1256_v10 = vmul.f32 %v1252_v57, %v2961_v42 }
 0xab4   :  { %v1239_v11 = vsel %vm108_vm1, %v1237_v61, %v1238_v47  ;;  %v1240_v8 = vsel %vm108_vm1, %v1236_v51, %v1237_v61  ;;  %v1251_v20 = vsel %vm141_vm2, %v1249_v60, %v1250_v59  ;;  %v1254_v58 = vsel %vm141_vm2, %v1250_v59, %v1247_v63 }
 0xab5   :  { %v1259_v9 = vpack.c.bf16 %v1244_v49, %v1243_v45  ;;  %v1378_v33 = vpack.c.bf16 %v1256_v10, %v1255_v5  ;;  %v1245_v12 = vmul.f32 %v1240_v8, %v2979_v55  ;;  %v1246_v13 = vmul.f32 %v1239_v11, %v2981_v56 }
 0xab6   :  { %v1257_v3 = vmul.f32 %v1251_v20, %v2959_v41  ;;  %v1258_v35 = vmul.f32 %v1254_v58, %v2973_v52 }
 0xab7   :  { %2344 = vmatmul.msk.bf16.vlgmr.msra.gmra.mxu2 %vm215_vm0, %v1259_v9  ;;  %2370 = vmatmul.msk.bf16.vlgmr.msrb.gmra.mxu3 %vm215_vm0, %v1378_v33  ;;  %v1260_v48 = vpack.c.bf16 %v1246_v13, %v1245_v12 }
 0xab8   :  { %v1379_v6 = vpack.c.bf16 %v1258_v35, %v1257_v3 }
 0xac7   :  { %2345 = vmatmul.msk.bf16.gmra.mxu2 %vm215_vm0, %v1260_v48  ;;  %2371 = vmatmul.msk.bf16.gmra.mxu3 %vm215_vm0, %v1379_v6  ;;  %v2597_v48 = vld [vmem:[%s3697_s19 + $0x38] sm:$0xff] }
 0xac8   :  { %1674 = vmatpush.bf16.msrb.mxu0 %v2597_v48 }
 0xad7   :  { %2458 = vmatmul.msk.bf16.vlgmr.msra.gmra.mxu3 %vm215_vm0, %v3192_v19 }
 0xae7   :  { %2459 = vmatmul.msk.bf16.gmra.mxu3 %vm215_vm0, %v3245_v4 }
 0xb2f   :  { %v1324_v19 = vpop.f32.mrf.mxu1 }
 0xb37   :  { %v1326_v37 = vpop.f32.mrf.mxu1 }
 0xb3a   :  { %v1368_v51 = vpop.f32.mrf.mxu2  ;;  %v1428_v63 = vpop.f32.mrf.mxu3 }
 0xb3b   :  { %v1369_v14 = vadd.f32 %v1368_v51, %v1319_v24 }
 0xb3d   :  { %v1438_v15 = vadd.f32 %v1428_v63, %v1369_v14 }
 0xb3f   :  { %v1445_v21 = vadd.f32 %v2690_v16, %v1438_v15 }
 0xb41   :  { %v1449_v26 = vsel %vm215_vm0, %v1445_v21, 0.0 }
 0xb42   :  { %v1370_v7 = vpop.f32.mrf.mxu2  ;;  %v1430_v17 = vpop.f32.mrf.mxu3 }
 0xb43   :  { %v1371_v18 = vadd.f32 %v1370_v7, %v1321_v2 }
 0xb45   :  { %v1439_v22 = vadd.f32 %v1430_v17, %v1371_v18 }
 0xb47   :  { %v1446_v23 = vadd.f32 %v2690_v16, %v1439_v22 }
 0xb49   :  { %v1450_v4 = vsel %vm215_vm0, %v1446_v23, 0.0 }
 0xb4a   :  { %v1373_v27 = vpop.f32.mrf.mxu2  ;;  %v1433_v31 = vpop.f32.mrf.mxu3  ;;  %v1451_v32 = vadd.f32 %v1450_v4, %v1449_v26  ;;  %v2596_v26 = vld [vmem:[%s3697_s19 + $0x30] sm:$0xff]  ;;  %v2595_v4 = vld [vmem:[%s3697_s19 + $0x28] sm:$0xff] }
 0xb4b   :  { %v1374_v34 = vadd.f32 %v1373_v27, %v1324_v19  ;;  %1675 = vmatpush.bf16.msrb.mxu0 %v2596_v26  ;;  %v2594_v27 = vld [vmem:[%s3697_s19 + $0x20] sm:$0xff] }
 0xb4c   :  { %1452 = vadd.xlane.f32.xlu1 %v1451_v32 }
 0xb4d   :  { %v1440_v36 = vadd.f32 %v1433_v31, %v1374_v34  ;;  %v3480_v31 = vld [vmem:[%s3695_s17] ss:$0 sm:$0xff] }
 0xb4f   :  { %v3453_v54 = vadd.f32 %v2690_v16, %v1440_v36  ;;  %1676 = vmatpush.bf16.msrb.mxu0 %v2595_v4 }
 0xb51   :  { %v1512_v0 = vsel %vm215_vm0, %v3453_v54, 0.0 }
 0xb52   :  { %v1375_v40 = vpop.f32.mrf.mxu2  ;;  %v1435_v53 = vpop.f32.mrf.mxu3 }
 0xb53   :  { %v1376_v46 = vadd.f32 %v1375_v40, %v1326_v37  ;;  %1677 = vmatpush.bf16.msrb.mxu0 %v2594_v27  ;;  %v3485_v37 = vld [vmem:[%s3696_s18] ss:$0 sm:$0xff] }
 0xb55   :  { %v1441_v38 = vadd.f32 %v1435_v53, %v1376_v46 }
 0xb57   :  { %v3455_v50 = vadd.f32 %v2690_v16, %v1441_v38 }
 0xb59   :  { %v1513_v1 = vsel %vm215_vm0, %v3455_v50, 0.0 }
 0xb5a   :  { %v1514_v62 = vadd.f32 %v1513_v1, %v1512_v0 }
 0xb5c   :  { %1515 = vadd.xlane.f32.xlu0 %v1514_v62 }
 0xbbf   :  { %v1453_v47 = vpop.xlane.xlu1 %1452 }
 0xbc0   :  { %v1454_v60 = vrot.slane %v1453_v47, 4 }
 0xbc2   :  { %v1455_v39 = vadd.f32 %v1454_v60, %v1453_v47 }
 0xbc4   :  { %v1456_v25 = vrot.slane %v1455_v39, 2 }
 0xbc6   :  { %v1457_v44 = vadd.f32 %v1456_v25, %v1455_v39 }
 0xbc8   :  { %v1458_v57 = vrot.slane %v1457_v44, 1 }
 0xbca   :  { %v1459_v45 = vadd.f32 %v1458_v57, %v1457_v44 }
 0xbcc   :  { %2664 = vpush %v1459_v45 }
 0xbcf   :  { %v1516_v6 = vpop.xlane.xlu0 %1515 }
 0xbd0   :  { %v1517_v24 = vrot.slane %v1516_v6, 4 }
 0xbd2   :  { %v1518_v63 = vadd.f32 %v1517_v24, %v1516_v6 }
 0xbd4   :  { %v1519_v14 = vrot.slane %v1518_v63, 2 }
 0xbd6   :  { %v1520_v16 = vadd.f32 %v1519_v14, %v1518_v63  ;;  %v2593_v14 = vld [vmem:[%s3697_s19 + $0x18] sm:$0xff] }
 0xbd7   :  { %1723 = vmatpush.bf16.msrb.mxu1 %v2593_v14  ;;  %v2694_v14 = vld [vmem:[%s3699_s20] ss:$0 sm:$0xff] }
 0xbfd   :  { %s2665_s16 = spop %2664 }
 0xbfe   :  { %s1469_s28 = smul.f32 %s2665_s16, %s3006_s27 }
 0xc00   :  { %v1470_v49 = vstv %s1469_s28 }
 0xc01   :  { %v1471_v5 = vsub.f32 %v1445_v21, %v1470_v49  ;;  %v1472_v10 = vsub.f32 %v1446_v23, %v1470_v49  ;;  %v1521_v21 = vrot.slane %v1520_v16, 1 }
 0xc03   :  { %v1473_v9 = vmul.f32 %v1471_v5, %v1471_v5  ;;  %v1474_v33 = vmul.f32 %v1472_v10, %v1472_v10  ;;  %v1522_v19 = vadd.f32 %v1521_v21, %v1520_v16  ;;  %v2600_v16 = vld [vmem:[%s3697_s19 + $0x50] sm:$0xff]  ;;  %v2598_v21 = vld [vmem:[%s3697_s19 + $0x40] sm:$0xff] }
 0xc05   :  { %v1475_v61 = vsel %vm215_vm0, %v1473_v9, 0.0  ;;  %v1476_v59 = vsel %vm215_vm0, %v1474_v33, 0.0 }
 0xc06   :  { %v1477_v11 = vadd.f32 %v1476_v59, %v1475_v61 }
 0xc08   :  { %1478 = vadd.xlane.f32.xlu2 %v1477_v11 }
 0xc7b   :  { %v1479_v8 = vpop.xlane.xlu2 %1478 }
 0xc7c   :  { %v1480_v20 = vrot.slane %v1479_v8, 4 }
 0xc7e   :  { %v1481_v58 = vadd.f32 %v1480_v20, %v1479_v8 }
 0xc80   :  { %v1482_v12 = vrot.slane %v1481_v58, 2 }
 0xc82   :  { %v1483_v13 = vadd.f32 %v1482_v12, %v1481_v58 }
 0xc84   :  { %v1484_v3 = vrot.slane %v1483_v13, 1 }
 0xc86   :  { %v1485_v35 = vadd.f32 %v1484_v3, %v1483_v13 }
 0xc88   :  { %2666 = vpush %v1485_v35 }
 0xcb9   :  { %s2667_s2 = spop %2666 }
 0xcba   :  { %s1495_s12 = smul.f32 %s2667_s2, %s3006_s27 }
 0xcbc   :  { %s1496_s9 = sadd.f32 1e-05, %s1495_s12 }
 0xcbe   :  { %v1497_v51 = vstv %s1496_s9 }
 0xcbf   :  { %2710 = vrsqrt.f32 %v1497_v51  ;;  %vm1504_vm10 = vweird.f32 %v1497_v51 }
 0xcc5   :  { %v2711_v2 = vpop.eup %2710 }
 0xcc6   :  { %v1499_v15 = vmul.f32 %v2711_v2, %v1497_v51  ;;  %vm1505_vm9 = vweird.f32 %v2711_v2 }
 0xcc7   :  { %vm1506_vm11 = vmor %vm1504_vm10, %vm1505_vm9 }
 0xcc8   :  { %v1500_v7 = vmul.f32 %v2711_v2, %v1499_v15  ;;  %v2592_v15 = vld [vmem:[%s3697_s19 + $0x10] sm:$0xff] }
 0xcc9   :  { %1724 = vmatpush.bf16.msrb.mxu1 %v2592_v15 }
 0xcca   :  { %v1501_v17 = vmul.f32 0.5, %v1500_v7  ;;  %v2591_v7 = vld [vmem:[%s3697_s19 + $0x8] sm:$0xff] }
 0xccc   :  { %v1502_v18 = vsub.f32 1.5, %v1501_v17  ;;  %v2599_v17 = vld [vmem:[%s3697_s19 + $0x48] sm:$0xff] }
 0xccd   :  { %1725 = vmatpush.bf16.msrb.mxu1 %v2591_v7 }
 0xcce   :  { %v1503_v22 = vmul.f32 %v2711_v2, %v1502_v18  ;;  %v2590_v18 = vld [vmem:[%s3697_s19] sm:$0xff] }
 0xcd0   :  { %v1507_v23 = vsel %vm1506_vm11, %v2711_v2, %v1503_v22  ;;  %v2601_v2 = vld [vmem:[%s3697_s19 + $0x58] sm:$0xff] }
 0xcd1   :  { %2668 = vpush %v1507_v23  ;;  %1783 = vmatpush.bf16.msrb.mxu2 %v2601_v2  ;;  %1726 = vmatpush.bf16.msrb.mxu1 %v2590_v18  ;;  %v2613_v23 = vld [vmem:[%s3698_s24 + $0x38] sm:$0xff] }
 0xcd2   :  { %2670 = vpush %v1522_v19 }
 0xcd5   :  { %1784 = vmatpush.bf16.msrb.mxu2 %v2600_v16  ;;  %2034 = vmatpush.bf16.msra.mxu1 %v2613_v23  ;;  %v2691_v16 = vld [vmem:[%s3694_s22] ss:$0 sm:$0xff] }
 0xcd9   :  { %1785 = vmatpush.bf16.msrb.mxu2 %v2599_v17 }
 0xcdd   :  { %1786 = vmatpush.bf16.msrb.mxu2 %v2598_v21 }
 0xd02   :  { %s2669_s10 = spop %2668 }
 0xd03   :  { %v1509_v32 = vstv %s2669_s10  ;;  %s2671_s0 = spop %2670 }
 0xd04   :  { %v1510_v34 = vmul.f32 %v1509_v32, %v1471_v5  ;;  %v1511_v36 = vmul.f32 %v1509_v32, %v1472_v10  ;;  %s1532_s21 = smul.f32 %s2671_s0, %s3006_s27 }
 0xd06   :  { %v1578_v40 = vmul.f32 %v3480_v31, %v1510_v34  ;;  %v1579_v46 = vmul.f32 %v3480_v31, %v1511_v36  ;;  %v1533_v53 = vstv %s1532_s21 }
 0xd07   :  { %v3491_v38 = vsub.f32 %v3453_v54, %v1533_v53  ;;  %v3494_v0 = vsub.f32 %v3455_v50, %v1533_v53 }
 0xd08   :  { %v1585_v1 = vadd.f32 %v3485_v37, %v1578_v40  ;;  %v1586_v62 = vadd.f32 %v3485_v37, %v1579_v46 }
 0xd09   :  { %v1536_v47 = vmul.f32 %v3491_v38, %v3491_v38  ;;  %v1537_v60 = vmul.f32 %v3494_v0, %v3494_v0 }
 0xd0a   :  { %v3502_v39 = vmax.f32 %v1585_v1, 0.0  ;;  %v3504_v25 = vmax.f32 %v1586_v62, 0.0 }
 0xd0b   :  { %v1538_v54 = vsel %vm215_vm0, %v1536_v47, 0.0  ;;  %v1539_v44 = vsel %vm215_vm0, %v1537_v60, 0.0 }
 0xd0c   :  { %v1595_v50 = vrot.slane %v3502_v39, 7  ;;  %v1596_v57 = vrot.slane %v3504_v25, 7  ;;  %v1607_v45 = vrot.slane %v3502_v39, 1  ;;  %v1608_v49 = vrot.slane %v3504_v25, 1 }
 0xd0d   :  { %v1629_v5 = vpack.c.bf16 %v3504_v25, %v3502_v39  ;;  %v1540_v10 = vadd.f32 %v1539_v44, %v1538_v54  ;;  %v2612_v39 = vld [vmem:[%s3698_s24 + $0x30] sm:$0xff] }
 0xd0e   :  { %v3520_v9 = vsel %vm108_vm1, %v1595_v50, %v1596_v57  ;;  %v3528_v33 = vsel %vm141_vm2, %v1607_v45, %v1608_v49  ;;  %2035 = vmatpush.bf16.msra.mxu1 %v2612_v39 }
 0xd0f   :  { %1541 = vadd.xlane.f32.xlu1 %v1540_v10  ;;  %2396 = vmatmul.msk.bf16.vlgmr.msrb.gmra.mxu0 %vm215_vm0, %v1629_v5  ;;  %v1615_v62 = vmul.f32 %v3528_v33, %v2939_v29 }
 0xd82   :  { %v1542_v61 = vpop.xlane.xlu1 %1541 }
 0xd83   :  { %v1543_v59 = vrot.slane %v1542_v61, 4 }
 0xd85   :  { %v1544_v11 = vadd.f32 %v1543_v59, %v1542_v61  ;;  %v2608_v61 = vld [vmem:[%s3698_s24 + $0x10] sm:$0xff]  ;;  %v2618_v59 = vld [vmem:[%s3698_s24 + $0x60] sm:$0xff] }
 0xd87   :  { %v1545_v8 = vrot.slane %v1544_v11, 2 }
 0xd89   :  { %v1546_v20 = vadd.f32 %v1545_v8, %v1544_v11  ;;  %v2607_v11 = vld [vmem:[%s3698_s24 + $0x8] sm:$0xff]  ;;  %v2617_v8 = vld [vmem:[%s3698_s24 + $0x58] sm:$0xff] }
 0xd8b   :  { %v1547_v58 = vrot.slane %v1546_v20, 1 }
 0xd8d   :  { %v1548_v12 = vadd.f32 %v1547_v58, %v1546_v20  ;;  %v2606_v20 = vld [vmem:[%s3698_s24] sm:$0xff]  ;;  %v2616_v58 = vld [vmem:[%s3698_s24 + $0x50] sm:$0xff] }
 0xd8f   :  { %2672 = vpush %v1548_v12  ;;  %v2615_v12 = vld [vmem:[%s3698_s24 + $0x48] sm:$0xff] }
 0xdc0   :  { %s2673_s17 = spop %2672 }
 0xdc1   :  { %s1558_s18 = smul.f32 %s2673_s17, %s3006_s27 }
 0xdc3   :  { %s1559_s8 = sadd.f32 1e-05, %s1558_s18 }
 0xdc5   :  { %v1560_v13 = vstv %s1559_s8 }
 0xdc6   :  { %2712 = vrsqrt.f32 %v1560_v13  ;;  %vm1567_vm13 = vweird.f32 %v1560_v13 }
 0xdcc   :  { %v2713_v3 = vpop.eup %2712 }
 0xdcd   :  { %v1562_v35 = vmul.f32 %v2713_v3, %v1560_v13  ;;  %vm1568_vm12 = vweird.f32 %v2713_v3  ;;  %v1853_v13 = vpop.f32.mrf.mxu3 }
 0xdce   :  { %vm1569_vm14 = vmor %vm1567_vm13, %vm1568_vm12  ;;  %v1854_v21 = vadd.f32 %v2691_v16, %v1853_v13 }
 0xdcf   :  { %v1563_v48 = vmul.f32 %v2713_v3, %v1562_v35 }
 0xdd1   :  { %v1564_v6 = vmul.f32 0.5, %v1563_v48  ;;  %v2614_v48 = vld [vmem:[%s3698_s24 + $0x40] sm:$0xff] }
 0xdd3   :  { %v1565_v24 = vsub.f32 1.5, %v1564_v6 }
 0xdd5   :  { %v1566_v51 = vmul.f32 %v2713_v3, %v1565_v24  ;;  %v1855_v2 = vpop.f32.mrf.mxu3 }
 0xdd7   :  { %v1570_v63 = vsel %vm1569_vm14, %v2713_v3, %v1566_v51  ;;  %v1679_v3 = vpop.f32.mrf.mxu0 }
 0xdd8   :  { %2674 = vpush %v1570_v63 }
 0xddf   :  { %v1681_v15 = vpop.f32.mrf.mxu0 }
 0xe09   :  { %s2675_s15 = spop %2674 }
 0xe0a   :  { %v1572_v22 = vstv %s2675_s15 }
 0xe0b   :  { %v1573_v19 = vmul.f32 %v1572_v22, %v3491_v38  ;;  %v1574_v26 = vmul.f32 %v1572_v22, %v3494_v0 }
 0xe0d   :  { %v1580_v4 = vmul.f32 %v3480_v31, %v1573_v19  ;;  %v1581_v27 = vmul.f32 %v3480_v31, %v1574_v26  ;;  %v1856_v19 = vadd.f32 %v2691_v16, %v1855_v2 }
 0xe0f   :  { %v1587_v32 = vadd.f32 %v3485_v37, %v1580_v4  ;;  %v1588_v34 = vadd.f32 %v3485_v37, %v1581_v27  ;;  %v1604_v37 = vmul.f32 %v3520_v9, %v2963_v43 }
 0xe11   :  { %v1591_v36 = vmax.f32 %v1587_v32, 0.0  ;;  %v1592_v40 = vmax.f32 %v1588_v34, 0.0  ;;  %v1858_v34 = vpop.f32.mrf.mxu3 }
 0xe13   :  { %v1598_v46 = vrot.slane %v1592_v40, 7  ;;  %v1609_v53 = vrot.slane %v1591_v36, 1  ;;  %v1630_v1 = vpack.c.bf16 %v1592_v40, %v1591_v36  ;;  %v1597_v44 = vrot.slane %v1591_v36, 7 }
 0xe15   :  { %v1602_v38 = vsel %vm108_vm1, %v1598_v46, %v1595_v50  ;;  %v1612_v0 = vsel %vm141_vm2, %v1608_v49, %v1609_v53  ;;  %2397 = vmatmul.msk.bf16.gmra.mxu0 %vm215_vm0, %v1630_v1  ;;  %v1610_v50 = vrot.slane %v1592_v40, 1  ;;  %v1599_v49 = vsel %vm108_vm1, %v1597_v44, %v1598_v46 }
 0xe16   :  { %v1603_v31 = vmul.f32 %v1602_v38, %v2941_v30  ;;  %v1616_v47 = vmul.f32 %v1612_v0, %v2961_v42  ;;  %v1600_v30 = vsel %vm108_vm1, %v1596_v57, %v1597_v44  ;;  %v1606_v5 = vmul.f32 %v1599_v49, %v2981_v56  ;;  %v2620_v56 = vld [vmem:[%s3698_s24 + $0x70] sm:$0xff]  ;;  %v2609_v57 = vld [vmem:[%s3698_s24 + $0x18] sm:$0xff] }
 0xe17   :  { %v1611_v29 = vsel %vm141_vm2, %v1609_v53, %v1610_v50  ;;  %v1614_v42 = vsel %vm141_vm2, %v1610_v50, %v1607_v45  ;;  %v1605_v43 = vmul.f32 %v1600_v30, %v2979_v55  ;;  %v2611_v55 = vld [vmem:[%s3698_s24 + $0x28] sm:$0xff]  ;;  %v1859_v0 = vadd.f32 %v2691_v16, %v1858_v34 }
 0xe18   :  { %v1619_v60 = vpack.c.bf16 %v1604_v37, %v1603_v31  ;;  %v1738_v54 = vpack.c.bf16 %v1616_v47, %v1615_v62  ;;  %v1617_v10 = vmul.f32 %v1611_v29, %v2959_v41  ;;  %v1618_v9 = vmul.f32 %v1614_v42, %v2973_v52  ;;  %2036 = vmatpush.bf16.msra.mxu1 %v2611_v55  ;;  %v2621_v41 = vld [vmem:[%s3698_s24 + $0x78] sm:$0xff]  ;;  %v2610_v52 = vld [vmem:[%s3698_s24 + $0x20] sm:$0xff]  ;;  %v2619_v45 = vld [vmem:[%s3698_s24 + $0x68] sm:$0xff] }
 0xe19   :  { %v1620_v25 = vpack.c.bf16 %v1606_v5, %v1605_v43  ;;  %1967 = vmatpush.bf16.msra.mxu0 %v2621_v41  ;;  %v1860_v50 = vpop.f32.mrf.mxu3  ;;  %vm2056_vm1 = vcmask 261120  }
 0xe1a   :  { %2414 = vmatmul.msk.bf16.vlgmr.msrb.gmra.mxu1 %vm215_vm0, %v1619_v60  ;;  %2440 = vmatmul.msk.bf16.vlgmr.msrb.gmra.mxu2 %vm215_vm0, %v1738_v54  ;;  %v1739_v33 = vpack.c.bf16 %v1618_v9, %v1617_v10  ;;  %v1861_v43 = vadd.f32 %v2691_v16, %v1860_v50 }
 0xe1c   :  { %2037 = vmatpush.bf16.msra.mxu1 %v2610_v52 }
 0xe1d   :  { %1968 = vmatpush.bf16.msra.mxu0 %v2620_v56 }
 0xe20   :  { %2038 = vmatpush.bf16.msra.mxu1 %v2609_v57 }
 0xe21   :  { %1969 = vmatpush.bf16.msra.mxu0 %v2619_v45 }
 0xe24   :  { %2039 = vmatpush.bf16.msra.mxu1 %v2608_v61 }
 0xe25   :  { %1970 = vmatpush.bf16.msra.mxu0 %v2618_v59 }
 0xe28   :  { %2040 = vmatpush.bf16.msra.mxu1 %v2607_v11 }
 0xe29   :  { %1971 = vmatpush.bf16.msra.mxu0 %v2617_v8 }
 0xe2a   :  { %2415 = vmatmul.msk.bf16.gmra.mxu1 %vm215_vm0, %v1620_v25  ;;  %2441 = vmatmul.msk.bf16.gmra.mxu2 %vm215_vm0, %v1739_v33 }
 0xe2c   :  { %2041 = vmatpush.bf16.msra.mxu1 %v2606_v20 }
 0xe2d   :  { %1972 = vmatpush.bf16.msra.mxu0 %v2616_v58 }
 0xe31   :  { %1973 = vmatpush.bf16.msra.mxu0 %v2615_v12 }
 0xe35   :  { %1974 = vmatpush.bf16.msra.mxu0 %v2614_v48 }
 0xe92   :  { %v1684_v27 = vpop.f32.mrf.mxu0 }
 0xe97   :  { %v1728_v35 = vpop.f32.mrf.mxu1 }
 0xe98   :  { %v1729_v24 = vadd.f32 %v1728_v35, %v1679_v3 }
 0xe9a   :  { %v1686_v47 = vpop.f32.mrf.mxu0 }
 0xe9d   :  { %v1788_v6 = vpop.f32.mrf.mxu2 }
 0xe9e   :  { %v1798_v63 = vadd.f32 %v1788_v6, %v1729_v24  ;;  %v1872_v6 = vld [vmem:[%s3701_s23 + $0x8] sm:$0xff]  ;;  %v2695_v24 = vld [vmem:[%s3700_s25] ss:$0 sm:$0xff] }
 0xe9f   :  { %v1730_v51 = vpop.f32.mrf.mxu1 }
 0xea0   :  { %v1805_v7 = vadd.f32 %v2694_v14, %v1798_v63  ;;  %v1731_v17 = vadd.f32 %v1730_v51, %v1681_v15 }
 0xea2   :  { %v1863_v26 = vadd.f32 %v1854_v21, %v1805_v7 }
 0xea4   :  { %v1867_v36 = vmax.f32 %v1863_v26, 0.0 }
 0xea5   :  { %v1790_v18 = vpop.f32.mrf.mxu2 }
 0xea6   :  { %v1799_v22 = vadd.f32 %v1790_v18, %v1731_v17  ;;  %v1874_v30 = vrot.slane %v1867_v36, 1 }
 0xea7   :  { %v1733_v23 = vpop.f32.mrf.mxu1 }
 0xea8   :  { %v1806_v4 = vadd.f32 %v2694_v14, %v1799_v22  ;;  %v1734_v46 = vadd.f32 %v1733_v23, %v1684_v27 }
 0xeaa   :  { %v1864_v32 = vadd.f32 %v1856_v19, %v1806_v4 }
 0xeac   :  { %v1868_v40 = vmax.f32 %v1864_v32, 0.0 }
 0xead   :  { %v1793_v53 = vpop.f32.mrf.mxu2 }
 0xeae   :  { %v1882_v1 = vpack.c.bf16 %v1868_v40, %v1867_v36  ;;  %v1800_v38 = vadd.f32 %v1793_v53, %v1734_v46  ;;  %v1875_v60 = vrot.slane %v1868_v40, 1 }
 0xeaf   :  { %v1735_v37 = vpop.f32.mrf.mxu1 }
 0xeb0   :  { %v1807_v31 = vadd.f32 %v2694_v14, %v1800_v38  ;;  %2042 = vmatmul.bf16.vlgmr.msra.gmra.mxu1 %v1882_v1  ;;  %v1736_v44 = vadd.f32 %v1735_v37, %v1686_v47  ;;  %v1880_v9 = vsel %vm141_vm2, %v1874_v30, %v1875_v60 }
 0xeb2   :  { %v1865_v62 = vadd.f32 %v1859_v0, %v1807_v31 }
 0xeb4   :  { %v1869_v54 = vmax.f32 %v1865_v62, 0.0 }
 0xeb5   :  { %v1795_v49 = vpop.f32.mrf.mxu2 }
 0xeb6   :  { %v1876_v29 = vrot.slane %v1869_v54, 1  ;;  %v1801_v42 = vadd.f32 %v1795_v49, %v1736_v44 }
 0xeb8   :  { %v1808_v5 = vadd.f32 %v2694_v14, %v1801_v42  ;;  %v1879_v10 = vsel %vm141_vm2, %v1875_v60, %v1876_v29 }
 0xeb9   :  { %v1900_v25 = vpack.c.bf16 %v1879_v10, %v1880_v9 }
 0xeba   :  { %v1866_v33 = vadd.f32 %v1861_v43, %v1808_v5 }
 0xebb   :  { %1975 = vmatmul.bf16.vlgmr.msra.gmra.mxu0 %v1900_v25 }
 0xebc   :  { %v1870_v39 = vmax.f32 %v1866_v33, 0.0 }
 0xebe   :  { %v1883_v55 = vpack.c.bf16 %v1870_v39, %v1869_v54  ;;  %v1877_v41 = vrot.slane %v1870_v39, 1 }
 0xec0   :  { %2047 = vmatmul.bf16.gmra.mxu1 %v1883_v55  ;;  %v1878_v52 = vsel %vm141_vm2, %v1876_v29, %v1877_v41  ;;  %v1881_v56 = vsel %vm141_vm2, %v1877_v41, %v1874_v30 }
 0xec1   :  { %v1901_v57 = vpack.c.bf16 %v1881_v56, %v1878_v52 }
 0xecb   :  { %1980 = vmatmul.bf16.gmra.mxu0 %v1901_v57 }
 0xf2d   :  { %v2043_v45 = vpop.f32.mrf.mxu1 }
 0xf35   :  { %v2045_v59 = vpop.f32.mrf.mxu1 }
 0xf38   :  { %v1976_v61 = vpop.f32.mrf.mxu0 }
 0xf39   :  { %v2044_v48 = vadd.f32 %v2043_v45, %v1976_v61 }
 0xf3d   :  { %v2048_v8 = vpop.f32.mrf.mxu1 }
 0xf40   :  { %v1978_v11 = vpop.f32.mrf.mxu0 }
 0xf41   :  { %v2046_v35 = vadd.f32 %v2045_v59, %v1978_v11 }
 0xf45   :  { %v2050_v58 = vpop.f32.mrf.mxu1 }
 0xf48   :  { %v1981_v20 = vpop.f32.mrf.mxu0 }
 0xf49   :  { %v2049_v3 = vadd.f32 %v2048_v8, %v1981_v20 }
 0xf50   :  { %v1983_v12 = vpop.f32.mrf.mxu0 }
 0xf51   :  { %v2051_v13 = vadd.f32 %v2050_v58, %v1983_v12 }
 0xf53   :  { %2075 = vmatpush.msra.mxu2 %v2051_v13 }
 0xf55   :  { %2076 = vmatpush.msra.mxu2 %v2049_v3 }
 0xf57   :  { %2077 = vmatpush.msra.mxu2 %v2046_v35 }
 0xf59   :  { %2078 = vmatpush.msra.mxu2 %v2044_v48 }
 0xf5a   :  { %2540 = vmatmul.msk.f32.vlgmr.msra.gmra.mxu2 %vm2056_vm1, %v1871_v28 }
 0xf62   :  { %2541 = vmatmul.msk.f32.gmra.mxu2 %vm2056_vm1, %v1872_v6 }
 0xfdd   :  { %v2080_v51 = vpop.f32.mrf.mxu2 }
 0xfde   :  { %v2081_v63 = vadd.f32 %v2695_v24, %v2080_v51 }
 0xfe0   :  { %2086 = vst.msk [vmem:[%s3702_s26] sm:$0xff] %vm215_vm0, %v2081_v63 }
 0xfe5   :  { %v2083_v14 = vpop.f32.mrf.mxu2 }
 0xfe6   :  { %v2084_v2 = vadd.f32 %v2695_v24, %v2083_v14 }
 0xfe8   :  { %2087 = vst.msk [vmem:[%s3702_s26 + $0x8] sm:$0xff] %vm215_vm0, %v2084_v2 }

</bundles_post_ra>
